<compile_context>
chip_gen: v6e
topology: v6e:2x2x1
jax: 0.10.0
libtpu: 0.0.40
codegen_flags: <defaults>
</compile_context>

<pallas_src>
import jax
import jax.numpy as jnp
from jax import lax
from jax.experimental import pallas as pl
from jax.experimental.pallas import tpu as pltpu


_VMEM_LIMIT = 48 * 1024 * 1024  # raise above v5e's 16 MiB default; fits v7x.


def _round_up(n, m):
    return ((n + m - 1) // m) * m


def _pad2(a, rows, cols, dtype):
    a = jnp.asarray(a)
    a = jnp.pad(a, ((0, rows - a.shape[0]), (0, cols - a.shape[1])))
    return a.astype(dtype)


# --------------------------------------------------------------------------
# Stage 1: fused L2-norm + encoder + latent head + decoder hidden layer.
# Grid: (batch_blocks, item_blocks);  item axis = K reduction for x @ We0.
# --------------------------------------------------------------------------
def _encoder_kernel(x_ref, we0_ref, be0_ref, wmu_ref, bmu_ref, wlv_ref, blv_ref,
                    wd0_ref, bd0_ref,
                    mu_ref, std_ref, hd_ref, klrow_ref,
                    h_acc, ss_acc):
    i = pl.program_id(1)

    @pl.when(i == 0)
    def _init():
        h_acc[...] = jnp.zeros_like(h_acc)
        ss_acc[...] = jnp.zeros_like(ss_acc)

    x = x_ref[...]                                   # (tb, ti), f32 or bf16
    x32 = x.astype(jnp.float32)
    ss_acc[...] += jnp.sum(x32 * x32, axis=1, keepdims=True)
    h_acc[...] += jnp.dot(x.astype(jnp.bfloat16), we0_ref[...],
                          preferred_element_type=jnp.float32)

    @pl.when(i == pl.num_programs(1) - 1)
    def _finalize():
        # (x / max(||x||, 1e-12)) @ W  ==  (x @ W) * rsqrt(max(||x||^2, 1e-24))
        inv_norm = lax.rsqrt(jnp.maximum(ss_acc[...], 1e-24))
        h = jnp.tanh(h_acc[...] * inv_norm + be0_ref[...])      # (tb, H_pad) f32
        h_bf = h.astype(jnp.bfloat16)

        mu = jnp.dot(h_bf, wmu_ref[...],
                     preferred_element_type=jnp.float32) + bmu_ref[...]
        logvar = jnp.dot(h_bf, wlv_ref[...],
                         preferred_element_type=jnp.float32) + blv_ref[...]
        std = jnp.exp(0.5 * logvar)

        # Per-row KL; exp(logvar) == std*std (one EUP pass, reused).  Padded
        # latent columns (W, b padded with 0) give 0.5*(-0 + 1 + 0 - 1) == 0,
        # so no masking is needed along the latent axis.
        kl_rows = jnp.sum(0.5 * (-logvar + std * std + mu * mu - 1.0),
                          axis=1, keepdims=True)

        # eval mode: sampled_z == mu, so feed mu straight into the decoder's
        # hidden layer (no separate z output / HBM stream).
        hd = jnp.tanh(jnp.dot(mu.astype(jnp.bfloat16), wd0_ref[...],
                              preferred_element_type=jnp.float32) + bd0_ref[...])

        mu_ref[...] = mu
        std_ref[...] = std
        hd_ref[...] = hd.astype(hd_ref.dtype)
        klrow_ref[...] = jnp.broadcast_to(kl_rows, klrow_ref.shape)


# --------------------------------------------------------------------------
# Stage 2: decoder output layer.  Grid (item_out_blocks, batch_blocks) so Wd1
# is weight-stationary (streamed exactly once); only hd re-streams per o pass.
# --------------------------------------------------------------------------
def _decoder_kernel(hd_ref, wd1_ref, bd1_ref, logits_ref):
    logits_ref[...] = (jnp.dot(hd_ref[...], wd1_ref[...],
                               preferred_element_type=jnp.float32)
                       + bd1_ref[...]).astype(logits_ref.dtype)


def _init_linear(key, in_features, out_features):
    """Matches the PyTorch module init: uniform(-limit, limit) weights with
    limit = sqrt(3 / ((in+out)/2)), N(0, 0.001) bias.  Weight is (in, out)."""
    kw, kb = jax.random.split(key)
    n = (in_features + out_features) / 2.0
    limit = (3.0 / n) ** 0.5
    w = jax.random.uniform(kw, (in_features, out_features), jnp.float32,
                           minval=-limit, maxval=limit)
    b = 0.001 * jax.random.normal(kb, (1, out_features), jnp.float32)
    return w, b


def make_multivae_params(key, q_dims, p_dims):
    assert q_dims[-1] == p_dims[0] and q_dims[0] == p_dims[-1]
    k0, k1, k2, k3 = jax.random.split(key, 4)
    we0, be0 = _init_linear(k0, q_dims[0], q_dims[1])        # n_items -> hidden
    we1, be1 = _init_linear(k1, q_dims[1], 2 * q_dims[2])    # hidden  -> 2*latent
    wd0, bd0 = _init_linear(k2, p_dims[0], p_dims[1])        # latent  -> hidden
    wd1, bd1 = _init_linear(k3, p_dims[1], p_dims[2])        # hidden  -> n_items
    return (we0, be0, we1, be1, wd0, bd0, wd1, bd1)


def multivae_forward(x, params, q_dims, p_dims, eps_key, *,
                     tb=512, ti=2048, to=2048,
                     logits_dtype=jnp.float32, slice_outputs=True):
    we0, be0, we1, be1, wd0, bd0, wd1, bd1 = params
    B, n_items = x.shape
    hidden, latent = q_dims[1], q_dims[2]
    assert n_items == q_dims[0] == p_dims[-1] and p_dims[0] == latent

    # Padded / tiled dims (pad small dims to lane width, batch to MXU height).
    H_pad = _round_up(hidden, 128)
    L_pad = _round_up(latent, 128)
    tb = min(tb, _round_up(B, 128))           # batch tile
    ti = min(ti, _round_up(n_items, 128))     # encoder K tile
    to = min(to, _round_up(n_items, 128))     # decoder N tile
    I_pad = _round_up(n_items, ti)
    O_pad = _round_up(n_items, to)
    B_pad = _round_up(B, tb)
    n_b, n_i, n_o = B_pad // tb, I_pad // ti, O_pad // to

    # x: if it already aligns to the tiles, feed it to the kernel as-is (f32,
    # no wrapper pad/cast pass; exact-f32 L2 norm).  Otherwise pad+cast once.
    if B == B_pad and n_items == I_pad:
        xp = x
    else:
        xp = _pad2(x, B_pad, I_pad, jnp.bfloat16)

    # Pad + cast weights.  Weights bf16 for the MXU, biases f32; zero padding
    # keeps all padded contributions exactly zero.
    we0p = _pad2(we0, I_pad, H_pad, jnp.bfloat16)
    be0p = _pad2(be0, 1,     H_pad, jnp.float32)
    wmu  = _pad2(we1[:, :latent], H_pad, L_pad, jnp.bfloat16)
    wlv  = _pad2(we1[:, latent:], H_pad, L_pad, jnp.bfloat16)
    bmu  = _pad2(be1[:, :latent], 1, L_pad, jnp.float32)
    blv  = _pad2(be1[:, latent:], 1, L_pad, jnp.float32)
    wd0p = _pad2(wd0, L_pad, H_pad, jnp.bfloat16)
    bd0p = _pad2(bd0, 1,     H_pad, jnp.float32)
    wd1p = _pad2(wd1, H_pad, O_pad, jnp.bfloat16)
    bd1p = _pad2(bd1, 1,     O_pad, jnp.float32)

    const = lambda b, i: (0, 0)   # small weights stay VMEM-resident (no re-DMA)

    # ---- Stage 1: encoder (streams x and We0 over the item / K axis) ----
    mu, std, hd, kl_rows = pl.pallas_call(
        _encoder_kernel,
        out_shape=(
            jax.ShapeDtypeStruct((B_pad, L_pad), jnp.float32),   # mu_q
            jax.ShapeDtypeStruct((B_pad, L_pad), jnp.float32),   # std_q
            jax.ShapeDtypeStruct((B_pad, H_pad), jnp.bfloat16),  # decoder hidden
            jax.ShapeDtypeStruct((B_pad, 128),   jnp.float32),   # per-row KL
        ),
        grid_spec=pltpu.PrefetchScalarGridSpec(
            num_scalar_prefetch=0,
            grid=(n_b, n_i),
            in_specs=[
                pl.BlockSpec((tb, ti),       lambda b, i: (b, i)),   # x (streamed)
                pl.BlockSpec((ti, H_pad),    lambda b, i: (i, 0)),   # We0 (streamed)
                pl.BlockSpec((1, H_pad),     const),                 # be0
                pl.BlockSpec((H_pad, L_pad), const),                 # W_mu
                pl.BlockSpec((1, L_pad),     const),                 # b_mu
                pl.BlockSpec((H_pad, L_pad), const),                 # W_logvar
                pl.BlockSpec((1, L_pad),     const),                 # b_logvar
                pl.BlockSpec((L_pad, H_pad), const),                 # Wd0
                pl.BlockSpec((1, H_pad),     const),                 # bd0
            ],
            out_specs=(
                pl.BlockSpec((tb, L_pad), lambda b, i: (b, 0)),
                pl.BlockSpec((tb, L_pad), lambda b, i: (b, 0)),
                pl.BlockSpec((tb, H_pad), lambda b, i: (b, 0)),
                pl.BlockSpec((tb, 128),   lambda b, i: (b, 0)),
            ),
            scratch_shapes=[
                pltpu.VMEM((tb, H_pad), jnp.float32),   # h accumulator
                pltpu.VMEM((tb, 1), jnp.float32),       # sum(x^2) accumulator
            ],
        ),
        compiler_params=pltpu.CompilerParams(
            dimension_semantics=("parallel", "arbitrary"),
            vmem_limit_bytes=_VMEM_LIMIT),
    )(xp, we0p, be0p, wmu, bmu, wlv, blv, wd0p, bd0p)

    # ---- Stage 2: decoder output, weight-stationary Wd1 (outer o, inner b) ----
    logits = pl.pallas_call(
        _decoder_kernel,
        out_shape=jax.ShapeDtypeStruct((B_pad, O_pad), logits_dtype),
        grid_spec=pltpu.PrefetchScalarGridSpec(
            num_scalar_prefetch=0,
            grid=(n_o, n_b),
            in_specs=[
                pl.BlockSpec((tb, H_pad), lambda o, b: (b, 0)),   # hd (re-streamed, small)
                pl.BlockSpec((H_pad, to), lambda o, b: (0, o)),   # Wd1 (stationary per o)
                pl.BlockSpec((1, to),     lambda o, b: (0, o)),   # bd1
            ],
            out_specs=pl.BlockSpec((tb, to), lambda o, b: (b, o)),
        ),
        compiler_params=pltpu.CompilerParams(
            dimension_semantics=("parallel", "parallel"),
            vmem_limit_bytes=_VMEM_LIMIT),
    )(hd, wd1p, bd1p)

    KL = jnp.sum(kl_rows[:B, 0]) / B

    # epsilon is returned by the PyTorch forward; in eval mode it is unused by
    # the compute path, so it is generated (deterministically) in plain JAX.
    epsilon = jax.random.normal(eps_key, (B, latent), jnp.float32)

    if slice_outputs:
        # NOTE: for very large B x n_items, pass slice_outputs=False and slice
        # lazily downstream to avoid an extra full read+write pass over logits.
        mu_o, std_o = mu[:B, :latent], std[:B, :latent]
        logits_o = logits[:B, :n_items]
    else:
        mu_o, std_o, logits_o = mu, std, logits

    # eval mode: sampled_z == mu_q.
    return logits_o, KL, mu_o, std_o, epsilon, mu_o


def multivae_reference(x, params, latent):
    """Pure-JAX f32 reference of the eval-mode forward (for verification)."""
    we0, be0, we1, be1, wd0, bd0, wd1, bd1 = params
    norm = jnp.sqrt(jnp.sum(x * x, axis=1, keepdims=True))
    xn = x / jnp.maximum(norm, 1e-12)
    h = jnp.tanh(xn @ we0 + be0)
    enc = h @ we1 + be1
    mu, logvar = enc[:, :latent], enc[:, latent:]
    std = jnp.exp(0.5 * logvar)
    kl = jnp.mean(jnp.sum(0.5 * (-logvar + jnp.exp(logvar) + mu * mu - 1.0), axis=1))
    z = mu
    logits = jnp.tanh(z @ wd0 + bd0) @ wd1 + bd1
    return logits, kl, mu, std, z


if __name__ == "__main__":
    # Small, TPU-friendly demo shapes consistent with the module:
    #   q_dims = [n_items, hidden, latent], p_dims = [latent, hidden, n_items]
    B, n_items, hidden, latent = 8, 256, 64, 32
    q_dims = [n_items, hidden, latent]
    p_dims = [latent, hidden, n_items]

    key = jax.random.PRNGKey(0)
    k_params, k_x, k_eps = jax.random.split(key, 3)

    params = make_multivae_params(k_params, q_dims, p_dims)
    # synthetic implicit-feedback-like input (non-negative)
    x = jax.random.uniform(k_x, (B, n_items), jnp.float32)

    outs = multivae_forward(x, params, q_dims, p_dims, k_eps)
    outs = jax.block_until_ready(outs)
    logits, KL, mu_q, std_q, epsilon, sampled_z = outs

    # Shape / sanity checks against the PyTorch interface.
    assert logits.shape == (B, n_items)
    assert KL.shape == ()
    assert mu_q.shape == (B, latent)
    assert std_q.shape == (B, latent)
    assert epsilon.shape == (B, latent)
    assert sampled_z.shape == (B, latent)
    assert bool(jnp.all(jnp.isfinite(logits))) and bool(jnp.isfinite(KL))

    # Numerical check vs. f32 pure-JAX reference (loose tolerance for bf16 MXU).
    r_logits, r_kl, r_mu, r_std, r_z = multivae_reference(x, params, latent)
    assert bool(jnp.allclose(logits, r_logits, atol=3e-2, rtol=3e-2))
    assert bool(jnp.allclose(mu_q, r_mu, atol=2e-2, rtol=2e-2))
    assert bool(jnp.allclose(std_q, r_std, atol=2e-2, rtol=2e-2))
    assert bool(jnp.allclose(sampled_z, r_z, atol=2e-2, rtol=2e-2))
    assert bool(jnp.allclose(KL, r_kl, atol=1e-2, rtol=1e-2))

    print("KERNEL_OK")
</pallas_src>

<mosaic_0001>
module attributes {stable_mosaic.version = 11 : i64} {
  func.func @_encoder_kernel(%arg0: i32, %arg1: i32, %arg2: memref<128x256xbf16, #tpu.memory_space<vmem>>, %arg3: memref<256x128xbf16, #tpu.memory_space<vmem>>, %arg4: memref<1x128xf32, #tpu.memory_space<vmem>>, %arg5: memref<128x128xbf16, #tpu.memory_space<vmem>>, %arg6: memref<1x128xf32, #tpu.memory_space<vmem>>, %arg7: memref<128x128xbf16, #tpu.memory_space<vmem>>, %arg8: memref<1x128xf32, #tpu.memory_space<vmem>>, %arg9: memref<128x128xbf16, #tpu.memory_space<vmem>>, %arg10: memref<1x128xf32, #tpu.memory_space<vmem>>, %arg11: memref<128x128xf32, #tpu.memory_space<vmem>>, %arg12: memref<128x128xf32, #tpu.memory_space<vmem>>, %arg13: memref<128x128xbf16, #tpu.memory_space<vmem>>, %arg14: memref<128x128xf32, #tpu.memory_space<vmem>>, %arg15: memref<128x128xf32, #tpu.memory_space<vmem>>, %arg16: memref<128x1xf32, #tpu.memory_space<vmem>>) attributes {dimension_semantics = [#tpu.dimension_semantics<parallel>, #tpu.dimension_semantics<arbitrary>], iteration_bounds = array<i64: 1, 1>, scalar_prefetch = 0 : i64, scratch_operands = 2 : i64, tpu.core_type = #tpu.core_type<tc>, window_params = [{transform_indices = @transform_0, window_bounds = array<i64: 128, 256>}, {transform_indices = @transform_1, window_bounds = array<i64: 256, 128>}, {pipeline_mode = #tpu.pipeline_mode<synchronous>, transform_indices = @transform_2, window_bounds = array<i64: 1, 128>}, {pipeline_mode = #tpu.pipeline_mode<synchronous>, transform_indices = @transform_3, window_bounds = array<i64: 128, 128>}, {pipeline_mode = #tpu.pipeline_mode<synchronous>, transform_indices = @transform_4, window_bounds = array<i64: 1, 128>}, {pipeline_mode = #tpu.pipeline_mode<synchronous>, transform_indices = @transform_5, window_bounds = array<i64: 128, 128>}, {pipeline_mode = #tpu.pipeline_mode<synchronous>, transform_indices = @transform_6, window_bounds = array<i64: 1, 128>}, {pipeline_mode = #tpu.pipeline_mode<synchronous>, transform_indices = @transform_7, window_bounds = array<i64: 128, 128>}, {pipeline_mode = #tpu.pipeline_mode<synchronous>, transform_indices = @transform_8, window_bounds = array<i64: 1, 128>}, {transform_indices = @transform_9, window_bounds = array<i64: 128, 128>}, {transform_indices = @transform_10, window_bounds = array<i64: 128, 128>}, {transform_indices = @transform_11, window_bounds = array<i64: 128, 128>}, {transform_indices = @transform_12, window_bounds = array<i64: 128, 128>}]} {
    %c0_i32 = arith.constant 0 : i32
    %0 = arith.cmpi eq, %arg1, %c0_i32 : i32
    %1 = arith.extui %0 : i1 to i32
    %c0_i32_0 = arith.constant 0 : i32
    %2 = arith.cmpi ne, %1, %c0_i32_0 : i32
    scf.if %2 {
      %cst_15 = arith.constant 0.000000e+00 : f32
      %19 = vector.broadcast %cst_15 : f32 to vector<128x128xf32>
      %c0_16 = arith.constant 0 : index
      %c0_17 = arith.constant 0 : index
      %20 = vector.load %arg15[%c0_16, %c0_17] : memref<128x128xf32, #tpu.memory_space<vmem>>, vector<128x128xf32>
      tpu.vector_store %arg15[%c0_16, %c0_17], %19 {strides = array<i32>} : memref<128x128xf32, #tpu.memory_space<vmem>>, vector<128x128xf32>,
      %cst_18 = arith.constant 0.000000e+00 : f32
      %21 = vector.broadcast %cst_18 : f32 to vector<128x1xf32>
      %c0_19 = arith.constant 0 : index
      %c0_20 = arith.constant 0 : index
      %22 = vector.load %arg16[%c0_19, %c0_20] : memref<128x1xf32, #tpu.memory_space<vmem>>, vector<128x1xf32>
      tpu.vector_store %arg16[%c0_19, %c0_20], %21 {strides = array<i32>} : memref<128x1xf32, #tpu.memory_space<vmem>>, vector<128x1xf32>,
    } else {
    }
    %c0 = arith.constant 0 : index
    %c0_1 = arith.constant 0 : index
    %3 = vector.load %arg2[%c0, %c0_1] : memref<128x256xbf16, #tpu.memory_space<vmem>>, vector<128x256xbf16>
    %4 = arith.extf %3 : vector<128x256xbf16> to vector<128x256xf32>
    %c0_2 = arith.constant 0 : index
    %c0_3 = arith.constant 0 : index
    %5 = vector.load %arg16[%c0_2, %c0_3] : memref<128x1xf32, #tpu.memory_space<vmem>>, vector<128x1xf32>
    %6 = arith.mulf %4, %4 : vector<128x256xf32>
    %cst = arith.constant dense<0.000000e+00> : vector<128xf32>
    %7 = vector.multi_reduction <add>, %6, %cst [1] : vector<128x256xf32> to vector<128xf32>
    %8 = vector.shape_cast %7 : vector<128xf32> to vector<128x1xf32>
    %9 = arith.addf %5, %8 : vector<128x1xf32>
    %c0_4 = arith.constant 0 : index
    %c0_5 = arith.constant 0 : index
    %10 = vector.load %arg16[%c0_4, %c0_5] : memref<128x1xf32, #tpu.memory_space<vmem>>, vector<128x1xf32>
    tpu.vector_store %arg16[%c0_4, %c0_5], %9 {strides = array<i32>} : memref<128x1xf32, #tpu.memory_space<vmem>>, vector<128x1xf32>,
    %c0_6 = arith.constant 0 : index
    %c0_7 = arith.constant 0 : index
    %11 = vector.load %arg15[%c0_6, %c0_7] : memref<128x128xf32, #tpu.memory_space<vmem>>, vector<128x128xf32>
    %c0_8 = arith.constant 0 : index
    %c0_9 = arith.constant 0 : index
    %12 = vector.load %arg3[%c0_8, %c0_9] : memref<256x128xbf16, #tpu.memory_space<vmem>>, vector<256x128xbf16>
    %cst_10 = arith.constant dense<0.000000e+00> : vector<128x128xf32>
    %13 = tpu.matmul %3, %12, %cst_10 {dimension_numbers = #tpu.dot_dimension_numbers<[1], [0], [0], [1], [0, 0, 1, 1], [], []>} : vector<128x256xbf16>, vector<256x128xbf16>, vector<128x128xf32> -> vector<128x128xf32>
    %14 = arith.addf %11, %13 : vector<128x128xf32>
    %c0_11 = arith.constant 0 : index
    %c0_12 = arith.constant 0 : index
    %15 = vector.load %arg15[%c0_11, %c0_12] : memref<128x128xf32, #tpu.memory_space<vmem>>, vector<128x128xf32>
    tpu.vector_store %arg15[%c0_11, %c0_12], %14 {strides = array<i32>} : memref<128x128xf32, #tpu.memory_space<vmem>>, vector<128x128xf32>,
    %c0_i32_13 = arith.constant 0 : i32
    %16 = arith.cmpi eq, %arg1, %c0_i32_13 : i32
    %17 = arith.extui %16 : i1 to i32
    %c0_i32_14 = arith.constant 0 : i32
    %18 = arith.cmpi ne, %17, %c0_i32_14 : i32
    scf.if %18 {
      %c0_15 = arith.constant 0 : index
      %c0_16 = arith.constant 0 : index
      %19 = vector.load %arg16[%c0_15, %c0_16] : memref<128x1xf32, #tpu.memory_space<vmem>>, vector<128x1xf32>
      %cst_17 = arith.constant 1.000000e-24 : f32
      %20 = vector.broadcast %cst_17 : f32 to vector<128x1xf32>
      %21 = arith.maximumf %19, %20 : vector<128x1xf32>
      %22 = math.rsqrt %21 : vector<128x1xf32>
      %c0_18 = arith.constant 0 : index
      %c0_19 = arith.constant 0 : index
      %23 = vector.load %arg15[%c0_18, %c0_19] : memref<128x128xf32, #tpu.memory_space<vmem>>, vector<128x128xf32>
      %24 = vector.broadcast %22 : vector<128x1xf32> to vector<128x128xf32>
      %25 = arith.mulf %23, %24 : vector<128x128xf32>
      %c0_20 = arith.constant 0 : index
      %c0_21 = arith.constant 0 : index
      %26 = vector.load %arg4[%c0_20, %c0_21] : memref<1x128xf32, #tpu.memory_space<vmem>>, vector<1x128xf32>
      %27 = vector.broadcast %26 : vector<1x128xf32> to vector<128x128xf32>
      %28 = arith.addf %25, %27 : vector<128x128xf32>
      %29 = math.tanh %28 : vector<128x128xf32>
      %30 = arith.truncf %29 : vector<128x128xf32> to vector<128x128xbf16>
      %c0_22 = arith.constant 0 : index
      %c0_23 = arith.constant 0 : index
      %31 = vector.load %arg5[%c0_22, %c0_23] : memref<128x128xbf16, #tpu.memory_space<vmem>>, vector<128x128xbf16>
      %cst_24 = arith.constant dense<0.000000e+00> : vector<128x128xf32>
      %32 = tpu.matmul %30, %31, %cst_24 {dimension_numbers = #tpu.dot_dimension_numbers<[1], [0], [0], [1], [0, 0, 1, 1], [], []>} : vector<128x128xbf16>, vector<128x128xbf16>, vector<128x128xf32> -> vector<128x128xf32>
      %c0_25 = arith.constant 0 : index
      %c0_26 = arith.constant 0 : index
      %33 = vector.load %arg6[%c0_25, %c0_26] : memref<1x128xf32, #tpu.memory_space<vmem>>, vector<1x128xf32>
      %34 = vector.broadcast %33 : vector<1x128xf32> to vector<128x128xf32>
      %35 = arith.addf %32, %34 : vector<128x128xf32>
      %c0_27 = arith.constant 0 : index
      %c0_28 = arith.constant 0 : index
      %36 = vector.load %arg7[%c0_27, %c0_28] : memref<128x128xbf16, #tpu.memory_space<vmem>>, vector<128x128xbf16>
      %cst_29 = arith.constant dense<0.000000e+00> : vector<128x128xf32>
      %37 = tpu.matmul %30, %36, %cst_29 {dimension_numbers = #tpu.dot_dimension_numbers<[1], [0], [0], [1], [0, 0, 1, 1], [], []>} : vector<128x128xbf16>, vector<128x128xbf16>, vector<128x128xf32> -> vector<128x128xf32>
      %c0_30 = arith.constant 0 : index
      %c0_31 = arith.constant 0 : index
      %38 = vector.load %arg8[%c0_30, %c0_31] : memref<1x128xf32, #tpu.memory_space<vmem>>, vector<1x128xf32>
      %39 = vector.broadcast %38 : vector<1x128xf32> to vector<128x128xf32>
      %40 = arith.addf %37, %39 : vector<128x128xf32>
      %cst_32 = arith.constant 5.000000e-01 : f32
      %41 = vector.broadcast %cst_32 : f32 to vector<128x128xf32>
      %42 = arith.mulf %41, %40 : vector<128x128xf32>
      %43 = math.exp %42 : vector<128x128xf32>
      %cst_33 = arith.constant 0.000000e+00 : f32
      %44 = vector.broadcast %cst_33 : f32 to vector<128x128xf32>
      %45 = arith.subf %44, %40 : vector<128x128xf32>
      %46 = arith.mulf %43, %43 : vector<128x128xf32>
      %47 = arith.addf %45, %46 : vector<128x128xf32>
      %48 = arith.mulf %35, %35 : vector<128x128xf32>
      %49 = arith.addf %47, %48 : vector<128x128xf32>
      %cst_34 = arith.constant 1.000000e+00 : f32
      %50 = vector.broadcast %cst_34 : f32 to vector<128x128xf32>
      %51 = arith.subf %49, %50 : vector<128x128xf32>
      %cst_35 = arith.constant 5.000000e-01 : f32
      %52 = vector.broadcast %cst_35 : f32 to vector<128x128xf32>
      %53 = arith.mulf %52, %51 : vector<128x128xf32>
      %cst_36 = arith.constant dense<0.000000e+00> : vector<128xf32>
      %54 = vector.multi_reduction <add>, %53, %cst_36 [1] : vector<128x128xf32> to vector<128xf32>
      %55 = vector.shape_cast %54 : vector<128xf32> to vector<128x1xf32>
      %56 = arith.truncf %35 : vector<128x128xf32> to vector<128x128xbf16>
      %c0_37 = arith.constant 0 : index
      %c0_38 = arith.constant 0 : index
      %57 = vector.load %arg9[%c0_37, %c0_38] : memref<128x128xbf16, #tpu.memory_space<vmem>>, vector<128x128xbf16>
      %cst_39 = arith.constant dense<0.000000e+00> : vector<128x128xf32>
      %58 = tpu.matmul %56, %57, %cst_39 {dimension_numbers = #tpu.dot_dimension_numbers<[1], [0], [0], [1], [0, 0, 1, 1], [], []>} : vector<128x128xbf16>, vector<128x128xbf16>, vector<128x128xf32> -> vector<128x128xf32>
      %c0_40 = arith.constant 0 : index
      %c0_41 = arith.constant 0 : index
      %59 = vector.load %arg10[%c0_40, %c0_41] : memref<1x128xf32, #tpu.memory_space<vmem>>, vector<1x128xf32>
      %60 = vector.broadcast %59 : vector<1x128xf32> to vector<128x128xf32>
      %61 = arith.addf %58, %60 : vector<128x128xf32>
      %62 = math.tanh %61 : vector<128x128xf32>
      %c0_42 = arith.constant 0 : index
      %c0_43 = arith.constant 0 : index
      %63 = vector.load %arg11[%c0_42, %c0_43] : memref<128x128xf32, #tpu.memory_space<vmem>>, vector<128x128xf32>
      tpu.vector_store %arg11[%c0_42, %c0_43], %35 {strides = array<i32>} : memref<128x128xf32, #tpu.memory_space<vmem>>, vector<128x128xf32>,
      %c0_44 = arith.constant 0 : index
      %c0_45 = arith.constant 0 : index
      %64 = vector.load %arg12[%c0_44, %c0_45] : memref<128x128xf32, #tpu.memory_space<vmem>>, vector<128x128xf32>
      tpu.vector_store %arg12[%c0_44, %c0_45], %43 {strides = array<i32>} : memref<128x128xf32, #tpu.memory_space<vmem>>, vector<128x128xf32>,
      %65 = arith.truncf %62 : vector<128x128xf32> to vector<128x128xbf16>
      %c0_46 = arith.constant 0 : index
      %c0_47 = arith.constant 0 : index
      %66 = vector.load %arg13[%c0_46, %c0_47] : memref<128x128xbf16, #tpu.memory_space<vmem>>, vector<128x128xbf16>
      tpu.vector_store %arg13[%c0_46, %c0_47], %65 {strides = array<i32>} : memref<128x128xbf16, #tpu.memory_space<vmem>>, vector<128x128xbf16>,
      %67 = vector.shape_cast %55 : vector<128x1xf32> to vector<128x1xf32>
      %68 = vector.broadcast %67 : vector<128x1xf32> to vector<128x128xf32>
      %c0_48 = arith.constant 0 : index
      %c0_49 = arith.constant 0 : index
      %69 = vector.load %arg14[%c0_48, %c0_49] : memref<128x128xf32, #tpu.memory_space<vmem>>, vector<128x128xf32>
      tpu.vector_store %arg14[%c0_48, %c0_49], %68 {strides = array<i32>} : memref<128x128xf32, #tpu.memory_space<vmem>>, vector<128x128xf32>,
    } else {
    }
    return
  }
  func.func @transform_0(%arg0: i32, %arg1: i32) -> (i32, i32) {
    %c0_i32 = arith.constant 0 : i32
    return %arg0, %arg1 : i32, i32
  }
  func.func @transform_1(%arg0: i32, %arg1: i32) -> (i32, i32) {
    %c0_i32 = arith.constant 0 : i32
    %c0_i32_0 = arith.constant 0 : i32
    return %arg1, %c0_i32 : i32, i32
  }
  func.func @transform_2(%arg0: i32, %arg1: i32) -> (i32, i32) {
    %c0_i32 = arith.constant 0 : i32
    %c0_i32_0 = arith.constant 0 : i32
    %c0_i32_1 = arith.constant 0 : i32
    return %c0_i32, %c0_i32_0 : i32, i32
  }
  func.func @transform_3(%arg0: i32, %arg1: i32) -> (i32, i32) {
    %c0_i32 = arith.constant 0 : i32
    %c0_i32_0 = arith.constant 0 : i32
    %c0_i32_1 = arith.constant 0 : i32
    return %c0_i32, %c0_i32_0 : i32, i32
  }
  func.func @transform_4(%arg0: i32, %arg1: i32) -> (i32, i32) {
    %c0_i32 = arith.constant 0 : i32
    %c0_i32_0 = arith.constant 0 : i32
    %c0_i32_1 = arith.constant 0 : i32
    return %c0_i32, %c0_i32_0 : i32, i32
  }
  func.func @transform_5(%arg0: i32, %arg1: i32) -> (i32, i32) {
    %c0_i32 = arith.constant 0 : i32
    %c0_i32_0 = arith.constant 0 : i32
    %c0_i32_1 = arith.constant 0 : i32
    return %c0_i32, %c0_i32_0 : i32, i32
  }
  func.func @transform_6(%arg0: i32, %arg1: i32) -> (i32, i32) {
    %c0_i32 = arith.constant 0 : i32
    %c0_i32_0 = arith.constant 0 : i32
    %c0_i32_1 = arith.constant 0 : i32
    return %c0_i32, %c0_i32_0 : i32, i32
  }
  func.func @transform_7(%arg0: i32, %arg1: i32) -> (i32, i32) {
    %c0_i32 = arith.constant 0 : i32
    %c0_i32_0 = arith.constant 0 : i32
    %c0_i32_1 = arith.constant 0 : i32
    return %c0_i32, %c0_i32_0 : i32, i32
  }
  func.func @transform_8(%arg0: i32, %arg1: i32) -> (i32, i32) {
    %c0_i32 = arith.constant 0 : i32
    %c0_i32_0 = arith.constant 0 : i32
    %c0_i32_1 = arith.constant 0 : i32
    return %c0_i32, %c0_i32_0 : i32, i32
  }
  func.func @transform_9(%arg0: i32, %arg1: i32) -> (i32, i32) {
    %c0_i32 = arith.constant 0 : i32
    %c0_i32_0 = arith.constant 0 : i32
    return %arg0, %c0_i32 : i32, i32
  }
  func.func @transform_10(%arg0: i32, %arg1: i32) -> (i32, i32) {
    %c0_i32 = arith.constant 0 : i32
    %c0_i32_0 = arith.constant 0 : i32
    return %arg0, %c0_i32 : i32, i32
  }
  func.func @transform_11(%arg0: i32, %arg1: i32) -> (i32, i32) {
    %c0_i32 = arith.constant 0 : i32
    %c0_i32_0 = arith.constant 0 : i32
    return %arg0, %c0_i32 : i32, i32
  }
  func.func @transform_12(%arg0: i32, %arg1: i32) -> (i32, i32) {
    %c0_i32 = arith.constant 0 : i32
    %c0_i32_0 = arith.constant 0 : i32
    return %arg0, %c0_i32 : i32, i32
  }
}

</mosaic_0001>

<bundles_post_ra>
// kernel: tpu_custom_call.1
= control target key start
LH: loop header
LB: loop body
LE: loop exit
PB: predicated region body
PF: predicated region fallthrough
CT: control target
= control target key end

     0   :  { %18 = vsyncpa [#allocation5], 0  ;;  %s3151_s0 = inlined_call_operand.hbm [shape: bf16[128,256], index: 0, kind: input, shape index: {}]   ;;  %s3152_s1 = inlined_call_operand.hbm [shape: bf16[256,128], index: 1, kind: input, shape index: {}]   ;;  %s3153_s2 = inlined_call_operand.vmem [shape: f32[1,128], index: 2, kind: input, shape index: {}]   ;;  %s3154_s3 = inlined_call_operand.hbm [shape: bf16[128,128], index: 3, kind: input, shape index: {}]   ;;  %s3155_s4 = inlined_call_operand.vmem [shape: f32[1,128], index: 4, kind: input, shape index: {}]   ;;  %s3156_s5 = inlined_call_operand.hbm [shape: bf16[128,128], index: 5, kind: input, shape index: {}]   ;;  %s3157_s6 = inlined_call_operand.vmem [shape: f32[1,128], index: 6, kind: input, shape index: {}]   ;;  %s3158_s7 = inlined_call_operand.hbm [shape: bf16[128,128], index: 7, kind: input, shape index: {}]   ;;  %s3159_s8 = inlined_call_operand.vmem [shape: f32[1,128], index: 8, kind: input, shape index: {}]   ;;  %s3160_s9 = inlined_call_operand.hbm [shape: f32[128,128], index: 9, kind: output, shape index: {0}]   ;;  %s3161_s10 = inlined_call_operand.hbm [shape: f32[128,128], index: 10, kind: output, shape index: {1}]   ;;  %s3162_s11 = inlined_call_operand.hbm [shape: bf16[128,128], index: 11, kind: output, shape index: {2}]   ;;  %s3163_s12 = inlined_call_operand.hbm [shape: f32[128,128], index: 12, kind: output, shape index: {3}]  }
   0x1   :  { %19 = vsyncpa [#allocation8], 0 }
   0x2   :  { %20 = vsyncpa [#allocation11], 0 }
   0x3   :  { %21 = vsyncpa [#allocation6], 0 }
   0x4   :  { %22 = vsyncpa [#allocation15], 0 }
   0x5   :  { %23 = vsyncpa [#allocation18], 0  ;;  %s2571_s21 = smov [#allocation7]  }
   0x6   :  { %s41_s22 = sshll.u32 %s2571_s21, 4  ;;  %s42_s22 = int_to_ptr.vmem [resolvable:$true] %s41_s22 }
   0x7   :  { %s2387_s23 = scalar_lea.vmem %s42_s22, 2048  ;;  %p2392_p1 = scmp.lt.s32.totalorder %s42_s22, %s42_s22 }
   0x8   :  { %p2388_p0 = scmp.ne.s32.totalorder %s42_s22, %s2387_s23  ;;  %p2393_p2 = scmp.lt.s32.totalorder %s2387_s23, %s2387_s23 }
   0xa   :  { %p2394_p3 = por %p2393_p2, %p2392_p1 }
   0xc   :  { %p2395_p4 = pnand %p2394_p3, %p2388_p0 }
   0xe   :  { %2398 = shalt.err (!%p2395_p4)
}
   0xf   :  { %s2572_s24 = smov 64   ;;  %s2573_s25 = smov 4  }
  0x10   :  { %47 = dma.hbm_to_vmem [thread:$0]  %s3152_s1, 2048, %s42_s22, [#allocation8], %s2572_s24, %s2572_s24, %s2573_s25  }
  0x11   :  { %s2574_s28 = smov [#allocation10]   ;;  %s2575_s30 = smov [#allocation4]  }
  0x12   :  { %s69_s29 = sshll.u32 %s2574_s28, 4  ;;  %s29_s13 = sshll.u32 %s2575_s30, 4  ;;  %s70_s29 = int_to_ptr.vmem [resolvable:$true] %s69_s29  ;;  %s30_s13 = int_to_ptr.vmem [resolvable:$true] %s29_s13 }
  0x13   :  { %s2407_s14 = scalar_lea.vmem %s70_s29, 1024  ;;  %p2412_p6 = scmp.lt.s32.totalorder %s70_s29, %s70_s29 }
  0x14   :  { %p2408_p5 = scmp.ne.s32.totalorder %s70_s29, %s2407_s14  ;;  %p2413_p7 = scmp.lt.s32.totalorder %s2407_s14, %s2407_s14 }
  0x16   :  { %p2414_p8 = por %p2413_p7, %p2412_p6 }
  0x18   :  { %p2415_p9 = pnand %p2414_p8, %p2408_p5 }
  0x1a   :  { %2418 = shalt.err (!%p2415_p9)
}
  0x1b   :  { %75 = dma.hbm_to_vmem [thread:$0]  %s3156_s5, 1024, %s70_s29, [#allocation11], %s2572_s24, %s2572_s24, %s2573_s25  }
  0x1c   :  { %s2427_s1 = scalar_lea.vmem %s30_s13, 2048  ;;  %p2432_p11 = scmp.lt.s32.totalorder %s30_s13, %s30_s13 }
  0x1d   :  { %p2428_p10 = scmp.ne.s32.totalorder %s30_s13, %s2427_s1  ;;  %p2433_p12 = scmp.lt.s32.totalorder %s2427_s1, %s2427_s1 }
  0x1f   :  { %p2434_p13 = por %p2433_p12, %p2432_p11 }
  0x21   :  { %p2435_p0 = pnand %p2434_p13, %p2428_p10 }
  0x23   :  { %2438 = shalt.err (!%p2435_p0)
}
  0x24   :  { %s2576_s17 = smov 128   ;;  %s2577_s18 = smov 8  }
  0x25   :  { %35 = dma.hbm_to_vmem [thread:$0]  %s3151_s0, 2048, %s30_s13, [#allocation5], %s2576_s17, %s2576_s17, %s2577_s18  }
  0x26   :  { %s2578_s21 = smov [#allocation9]   ;;  %s2579_s5 = smov [#allocation12]  }
  0x27   :  { %s55_s22 = sshll.u32 %s2578_s21, 4  ;;  %s83_s23 = sshll.u32 %s2579_s5, 4  ;;  %s56_s22 = int_to_ptr.vmem [resolvable:$true] %s55_s22  ;;  %s84_s23 = int_to_ptr.vmem [resolvable:$true] %s83_s23 }
  0x28   :  { %s2447_s26 = scalar_lea.vmem %s56_s22, 1024  ;;  %p2452_p2 = scmp.lt.s32.totalorder %s56_s22, %s56_s22 }
  0x29   :  { %p2448_p1 = scmp.ne.s32.totalorder %s56_s22, %s2447_s26  ;;  %p2453_p3 = scmp.lt.s32.totalorder %s2447_s26, %s2447_s26 }
  0x2b   :  { %p2454_p4 = por %p2453_p3, %p2452_p2 }
  0x2d   :  { %p2455_p5 = pnand %p2454_p4, %p2448_p1 }
  0x2f   :  { %2458 = shalt.err (!%p2455_p5)
}
  0x30   :  { %61 = dma.hbm_to_vmem [thread:$0]  %s3154_s3, 1024, %s56_s22, [#allocation8], %s2572_s24, %s2572_s24, %s2573_s25  }
  0x31   :  { %s2467_s0 = scalar_lea.vmem %s84_s23, 1024  ;;  %p2472_p7 = scmp.lt.s32.totalorder %s84_s23, %s84_s23 }
  0x32   :  { %p2468_p6 = scmp.ne.s32.totalorder %s84_s23, %s2467_s0  ;;  %p2473_p8 = scmp.lt.s32.totalorder %s2467_s0, %s2467_s0 }
  0x34   :  { %p2474_p9 = por %p2473_p8, %p2472_p7 }
  0x36   :  { %p2475_p10 = pnand %p2474_p9, %p2468_p6 }
  0x38   :  { %2478 = shalt.err (!%p2475_p10)
}
  0x39   :  { %89 = dma.hbm_to_vmem [thread:$0]  %s3158_s7, 1024, %s84_s23, [#allocation11], %s2572_s24, %s2572_s24, %s2573_s25  }
  0x3a   :  { %2559 = dma.done.wait [#allocation5], 2048  }
  0x3b   :  { %2560 = vsyncadd [#allocation5], 4294965248 }
  0x3c   :  { %2561 = dma.done.wait [#allocation8], 3072  }
  0x3d   :  { %2562 = vsyncadd [#allocation8], 4294964224 }
  0x3e   :  { %2563 = dma.done.wait [#allocation11], 2048  }
  0x3f   :  { %2564 = vsyncadd [#allocation11], 4294965248  ;;  %vm128_vm0 = vcmask 7168   ;;  %v2580_v0 = vmov 0.0   ;;  %v2697_v1 = vld [vmem:[#allocation4 + $0x10] sm:$0xff]  ;;  %v2699_v2 = vld [vmem:[#allocation4] sm:$0xff] }
  0x40   :  { %131 = vst.msk [vmem:[#allocation3 + $0x10] sm:$0xff] %vm128_vm0, %v2580_v0  ;;  %129 = vst.msk [vmem:[#allocation3] sm:$0xff] %vm128_vm0, %v2580_v0  ;;  %v2701_v3 = vld [vmem:[#allocation4 + $0x18] sm:$0xff]  ;;  %v165_v4 = vunpack.c.l.bf16 %v2697_v1  ;;  %v166_v5 = vunpack.c.h.bf16 %v2697_v1  ;;  %v161_v6 = vunpack.c.l.bf16 %v2699_v2  ;;  %v162_v7 = vunpack.c.h.bf16 %v2699_v2  ;;  %v2707_v8 = vld [vmem:[#allocation4 + $0x8] sm:$0xff]  ;;  %s2583_s16 = smov [#allocation13]  }
  0x41   :  { %130 = vst.msk [vmem:[#allocation3 + $0x8] sm:$0xff] %vm128_vm0, %v2580_v0  ;;  %132 = vst.msk [vmem:[#allocation3 + $0x18] sm:$0xff] %vm128_vm0, %v2580_v0  ;;  %v167_v9 = vunpack.c.l.bf16 %v2701_v3  ;;  %v168_v10 = vunpack.c.h.bf16 %v2701_v3  ;;  %v163_v11 = vunpack.c.l.bf16 %v2707_v8  ;;  %v164_v12 = vunpack.c.h.bf16 %v2707_v8  ;;  %v2713_v13 = vld [vmem:[#allocation4 + $0x28] sm:$0xff]  ;;  %v2715_v18 = vld [vmem:[#allocation4 + $0x38] sm:$0xff]  ;;  %s1738_s1 = sshll.u32 %s2583_s16, 4  ;;  %s1739_s1 = int_to_ptr.vmem [resolvable:$true] %s1738_s1 }
  0x42   :  { %133 = vst.msk [vmem:[#allocation3 + $0x20] sm:$0xff] %vm128_vm0, %v2580_v0  ;;  %134 = vst.msk [vmem:[#allocation3 + $0x28] sm:$0xff] %vm128_vm0, %v2580_v0  ;;  %v213_v14 = vmul.f32 %v165_v4, %v165_v4  ;;  %v214_v15 = vmul.f32 %v166_v5, %v166_v5  ;;  %v209_v16 = vmul.f32 %v161_v6, %v161_v6  ;;  %v2717_v23 = vld [vmem:[#allocation4 + $0x48] sm:$0xff]  ;;  %v2195_v24 = vld [vmem:[#allocation7 + $0x78] sm:$0xff]   ;;  %v171_v27 = vunpack.c.l.bf16 %v2713_v13 }
  0x43   :  { %135 = vst.msk [vmem:[#allocation3 + $0x30] sm:$0xff] %vm128_vm0, %v2580_v0  ;;  %136 = vst.msk [vmem:[#allocation3 + $0x38] sm:$0xff] %vm128_vm0, %v2580_v0  ;;  %v210_v17 = vmul.f32 %v162_v7, %v162_v7  ;;  %v215_v19 = vmul.f32 %v167_v9, %v167_v9  ;;  %v216_v20 = vmul.f32 %v168_v10, %v168_v10  ;;  %v172_v28 = vunpack.c.h.bf16 %v2713_v13  ;;  %v2721_v29 = vld [vmem:[#allocation4 + $0x20] sm:$0xff]  ;;  %v2196_v30 = vld [vmem:[#allocation7 + $0x38] sm:$0xff]  }
  0x44   :  { %137 = vst.msk [vmem:[#allocation3 + $0x40] sm:$0xff] %vm128_vm0, %v2580_v0  ;;  %138 = vst.msk [vmem:[#allocation3 + $0x48] sm:$0xff] %vm128_vm0, %v2580_v0  ;;  %v211_v21 = vmul.f32 %v163_v11, %v163_v11  ;;  %v212_v22 = vmul.f32 %v164_v12, %v164_v12  ;;  %v247_v25 = vadd.f32 %v214_v15, %v213_v14  ;;  %1954 = vmatprep.subr.bf16.mxu0 %v2195_v24  ;;  %v2197_v33 = vld [vmem:[#allocation7 + $0x70] sm:$0xff]   ;;  %v2199_v44 = vld [vmem:[#allocation7 + $0x68] sm:$0xff]  }
  0x45   :  { %139 = vst.msk [vmem:[#allocation3 + $0x50] sm:$0xff] %vm128_vm0, %v2580_v0  ;;  %140 = vst.msk [vmem:[#allocation3 + $0x58] sm:$0xff] %vm128_vm0, %v2580_v0  ;;  %v241_v26 = vadd.f32 %v210_v17, %v209_v16  ;;  %v250_v31 = vadd.f32 %v216_v20, %v215_v19  ;;  %v219_v34 = vmul.f32 %v171_v27, %v171_v27  ;;  %v175_v36 = vunpack.c.l.bf16 %v2715_v18  ;;  %v2725_v38 = vld [vmem:[#allocation4 + $0x30] sm:$0xff]  ;;  %v2731_v47 = vld [vmem:[#allocation4 + $0x58] sm:$0xff] }
  0x46   :  { %141 = vst.msk [vmem:[#allocation3 + $0x60] sm:$0xff] %vm128_vm0, %v2580_v0  ;;  %142 = vst.msk [vmem:[#allocation3 + $0x68] sm:$0xff] %vm128_vm0, %v2580_v0  ;;  %v244_v32 = vadd.f32 %v212_v22, %v211_v21  ;;  %248 = vadd.xlane.f32.xlu1 %v247_v25  ;;  %v220_v35 = vmul.f32 %v172_v28, %v172_v28  ;;  %v176_v37 = vunpack.c.h.bf16 %v2715_v18  ;;  %v169_v39 = vunpack.c.l.bf16 %v2721_v29  ;;  %v2198_v41 = vld [vmem:[#allocation7 + $0x30] sm:$0xff]   ;;  %v2733_v51 = vld [vmem:[#allocation4 + $0x40] sm:$0xff] }
  0x47   :  { %143 = vst.msk [vmem:[#allocation3 + $0x70] sm:$0xff] %vm128_vm0, %v2580_v0  ;;  %144 = vst.msk [vmem:[#allocation3 + $0x78] sm:$0xff] %vm128_vm0, %v2580_v0  ;;  %242 = vadd.xlane.f32.xlu0 %v241_v26  ;;  %v170_v40 = vunpack.c.h.bf16 %v2721_v29  ;;  %1955 = vmatpush3.bf16.msra.mxu0 %v2196_v30  ;;  %v179_v42 = vunpack.c.l.bf16 %v2717_v23  ;;  %v180_v43 = vunpack.c.h.bf16 %v2717_v23  ;;  %v223_v49 = vmul.f32 %v175_v36, %v175_v36  ;;  %v2200_v55 = vld [vmem:[#allocation7 + $0x28] sm:$0xff]   ;;  %v2737_v56 = vld [vmem:[#allocation4 + $0x50] sm:$0xff] }
  0x48   :  { %1956 = vmatprep.subr.bf16.mxu0 %v2197_v33  ;;  %v217_v45 = vmul.f32 %v169_v39, %v169_v39  ;;  %v256_v48 = vadd.f32 %v220_v35, %v219_v34  ;;  %v224_v50 = vmul.f32 %v176_v37, %v176_v37  ;;  %v173_v53 = vunpack.c.l.bf16 %v2725_v38  ;;  %v2201_v60 = vld [vmem:[#allocation7 + $0x60] sm:$0xff]   ;;  %v2741_v62 = vld [vmem:[#allocation4 + $0x68] sm:$0xff]  ;;  %v2203_v19 = vld [vmem:[#allocation7 + $0x58] sm:$0xff]  }
  0x49   :  { %v218_v46 = vmul.f32 %v170_v40, %v170_v40  ;;  %v174_v54 = vunpack.c.h.bf16 %v2725_v38  ;;  %v227_v57 = vmul.f32 %v179_v42, %v179_v42  ;;  %v228_v58 = vmul.f32 %v180_v43, %v180_v43  ;;  %v2745_v7 = vld [vmem:[#allocation4 + $0x60] sm:$0xff]  ;;  %v2751_v24 = vld [vmem:[#allocation4 + $0x78] sm:$0xff]  ;;  %v2205_v36 = vld [vmem:[#allocation7 + $0x50] sm:$0xff]  }
  0x4a   :  { %251 = vadd.xlane.f32.xlu1 %v250_v31  ;;  %v183_v59 = vunpack.c.l.bf16 %v2731_v47  ;;  %v184_v61 = vunpack.c.h.bf16 %v2731_v47  ;;  %v221_v63 = vmul.f32 %v173_v53, %v173_v53  ;;  %v177_v4 = vunpack.c.l.bf16 %v2733_v51  ;;  %v2202_v14 = vld [vmem:[#allocation7 + $0x20] sm:$0xff]   ;;  %v2755_v31 = vld [vmem:[#allocation4 + $0x70] sm:$0xff] }
  0x4b   :  { %245 = vadd.xlane.f32.xlu0 %v244_v32  ;;  %v253_v52 = vadd.f32 %v218_v46, %v217_v45  ;;  %1957 = vmatpush3.bf16.msra.mxu0 %v2198_v41  ;;  %v222_v0 = vmul.f32 %v174_v54, %v174_v54  ;;  %v262_v5 = vadd.f32 %v224_v50, %v223_v49  ;;  %v178_v6 = vunpack.c.h.bf16 %v2733_v51  ;;  %v2204_v32 = vld [vmem:[#allocation7 + $0x18] sm:$0xff]   ;;  %v2206_v42 = vld [vmem:[#allocation7 + $0x10] sm:$0xff]   ;;  %v2208_v54 = vld [vmem:[#allocation7 + $0x8] sm:$0xff]  }
  0x4c   :  { %1958 = vmatprep.subr.bf16.mxu0 %v2199_v44  ;;  %v225_v10 = vmul.f32 %v177_v4, %v177_v4  ;;  %v181_v11 = vunpack.c.l.bf16 %v2737_v56  ;;  %v182_v12 = vunpack.c.h.bf16 %v2737_v56  ;;  %v187_v15 = vunpack.c.l.bf16 %v2741_v62 }
  0x4d   :  { %v259_v9 = vadd.f32 %v222_v0, %v221_v63  ;;  %v188_v16 = vunpack.c.h.bf16 %v2741_v62  ;;  %v226_v17 = vmul.f32 %v178_v6, %v178_v6  ;;  %v268_v20 = vadd.f32 %v228_v58, %v227_v57  ;;  %v2210_v63 = vld [vmem:[#allocation7] sm:$0xff]  }
  0x4e   :  { %257 = vadd.xlane.f32.xlu1 %v256_v48  ;;  %v231_v21 = vmul.f32 %v183_v59, %v183_v59  ;;  %v232_v22 = vmul.f32 %v184_v61, %v184_v61  ;;  %v185_v25 = vunpack.c.l.bf16 %v2745_v7  ;;  %v229_v27 = vmul.f32 %v181_v11, %v181_v11  ;;  %v2207_v48 = vld [vmem:[#allocation7 + $0x48] sm:$0xff]   ;;  %v2209_v59 = vld [vmem:[#allocation7 + $0x40] sm:$0xff]  }
  0x4f   :  { %254 = vadd.xlane.f32.xlu0 %v253_v52  ;;  %1959 = vmatpush3.bf16.msra.mxu0 %v2200_v55  ;;  %v265_v26 = vadd.f32 %v226_v17, %v225_v10  ;;  %v230_v28 = vmul.f32 %v182_v12, %v182_v12  ;;  %v186_v30 = vunpack.c.h.bf16 %v2745_v7  ;;  %v1800_v33 = vcombine.high %v2699_v2, %v2707_v8 }
  0x50   :  { %1960 = vmatprep.subr.bf16.mxu0 %v2201_v60  ;;  %v235_v34 = vmul.f32 %v187_v15, %v187_v15  ;;  %v236_v35 = vmul.f32 %v188_v16, %v188_v16  ;;  %v274_v37 = vadd.f32 %v232_v22, %v231_v21  ;;  %v191_v39 = vunpack.c.l.bf16 %v2751_v24  ;;  %v194_v16 = vld [vmem:[#allocation3 + $0x8] sm:$0xff]  ;;  %v197_v21 = vld [vmem:[#allocation3 + $0x20] sm:$0xff] }
  0x51   :  { %v192_v40 = vunpack.c.h.bf16 %v2751_v24  ;;  %v189_v41 = vunpack.c.l.bf16 %v2755_v31  ;;  %578 = vmatprep.mubr.bf16.mxu0 %v1800_v33  ;;  %v271_v43 = vadd.f32 %v230_v28, %v229_v27  ;;  %v233_v44 = vmul.f32 %v185_v25, %v185_v25  ;;  %v200_v27 = vld [vmem:[#allocation3 + $0x38] sm:$0xff]  ;;  %v199_v28 = vld [vmem:[#allocation3 + $0x30] sm:$0xff] }
  0x52   :  { %263 = vadd.xlane.f32.xlu1 %v262_v5  ;;  %v234_v45 = vmul.f32 %v186_v30, %v186_v30  ;;  %v190_v46 = vunpack.c.h.bf16 %v2755_v31  ;;  %v1813_v49 = vcombine.low %v2755_v31, %v2751_v24  ;;  %v280_v50 = vadd.f32 %v236_v35, %v235_v34 }
  0x53   :  { %260 = vadd.xlane.f32.xlu0 %v259_v9  ;;  %1961 = vmatpush3.bf16.msra.mxu0 %v2202_v14  ;;  %v239_v52 = vmul.f32 %v191_v39, %v191_v39  ;;  %v240_v53 = vmul.f32 %v192_v40, %v192_v40  ;;  %v237_v57 = vmul.f32 %v189_v41, %v189_v41  ;;  %v2581_v5 = vmov 0   ;;  %v201_v40 = vld [vmem:[#allocation3 + $0x40] sm:$0xff] }
  0x54   :  { %1962 = vmatprep.subr.bf16.mxu0 %v2203_v19  ;;  %v277_v55 = vadd.f32 %v234_v45, %v233_v44  ;;  %v238_v58 = vmul.f32 %v190_v46, %v190_v46  ;;  %v1799_v0 = vcombine.low %v2699_v2, %v2707_v8  ;;  %v1802_v4 = vcombine.high %v2697_v1, %v2701_v3 }
  0x55   :  { %v286_v60 = vadd.f32 %v240_v53, %v239_v52  ;;  %2193 = vset.pattern.permute.xlu0 %v2581_v5  ;;  %2194 = vset.pattern.permute.xlu1 %v2581_v5  ;;  %v1801_v6 = vcombine.low %v2697_v1, %v2701_v3  ;;  %v1804_v9 = vcombine.high %v2721_v29, %v2713_v13 }
  0x56   :  { %269 = vadd.xlane.f32.xlu1 %v268_v20  ;;  %v283_v61 = vadd.f32 %v238_v58, %v237_v57  ;;  %v1803_v2 = vcombine.low %v2721_v29, %v2713_v13  ;;  %v1806_v8 = vcombine.high %v2725_v38, %v2715_v18  ;;  %v1805_v10 = vcombine.low %v2725_v38, %v2715_v18  ;;  %v198_v20 = vld [vmem:[#allocation3 + $0x28] sm:$0xff] }
  0x57   :  { %266 = vadd.xlane.f32.xlu0 %v265_v26  ;;  %1963 = vmatpush3.bf16.msra.mxu0 %v2204_v32  ;;  %v1808_v11 = vcombine.high %v2733_v51, %v2717_v23  ;;  %v1807_v1 = vcombine.low %v2733_v51, %v2717_v23  ;;  %v1810_v3 = vcombine.high %v2737_v56, %v2731_v47  ;;  %v195_v23 = vld [vmem:[#allocation3 + $0x10] sm:$0xff]  ;;  %v193_v51 = vld [vmem:[#allocation3] sm:$0xff] }
  0x58   :  { %1964 = vmatprep.subr.bf16.mxu0 %v2205_v36  ;;  %v1809_v13 = vcombine.low %v2737_v56, %v2731_v47  ;;  %v1812_v29 = vcombine.high %v2745_v7, %v2741_v62  ;;  %v1811_v18 = vcombine.low %v2745_v7, %v2741_v62  ;;  %v1814_v38 = vcombine.high %v2755_v31, %v2751_v24  ;;  %v196_v56 = vld [vmem:[#allocation3 + $0x18] sm:$0xff] }
  0x5a   :  { %275 = vadd.xlane.f32.xlu1 %v274_v37  ;;  %v202_v37 = vld [vmem:[#allocation3 + $0x48] sm:$0xff] }
  0x5b   :  { %272 = vadd.xlane.f32.xlu0 %v271_v43  ;;  %1965 = vmatpush3.bf16.msra.mxu0 %v2206_v42 }
  0x5c   :  { %1966 = vmatprep.subr.bf16.mxu0 %v2207_v48 }
  0x5e   :  { %281 = vadd.xlane.f32.xlu1 %v280_v50  ;;  %v203_v50 = vld [vmem:[#allocation3 + $0x50] sm:$0xff] }
  0x5f   :  { %278 = vadd.xlane.f32.xlu0 %v277_v55  ;;  %1967 = vmatpush3.bf16.msra.mxu0 %v2208_v54 }
  0x60   :  { %1968 = vmatprep.subr.bf16.mxu0 %v2209_v59  ;;  %v2227_v59 = vld [vmem:[#allocation9 + $0x38] sm:$0xff]  }
  0x61   :  { %2066 = vmatprep.subr.bf16.mxu1 %v2227_v59 }
  0x62   :  { %287 = vadd.xlane.f32.xlu1 %v286_v60  ;;  %v206_v60 = vld [vmem:[#allocation3 + $0x68] sm:$0xff]  ;;  %2067 = vmatpush3.bf16.msra.mxu1 %v2227_v59 }
  0x63   :  { %284 = vadd.xlane.f32.xlu0 %v283_v61  ;;  %1969 = vmatpush3.bf16.msra.mxu0 %v2210_v63  ;;  %v205_v61 = vld [vmem:[#allocation3 + $0x60] sm:$0xff] }
  0x66   :  { %579 = vmatmul.mubr.bf16.vlgmr.msra.gmra.mxu0 %v1799_v0 }
  0x67   :  { %586 = vmatprep.mubr.bf16.mxu0 %v1802_v4 }
  0x6e   :  { %587 = vmatmul.mubr.bf16.gmra.mxu0 %v1801_v6 }
  0x6f   :  { %594 = vmatprep.mubr.bf16.mxu0 %v1804_v9 }
  0x76   :  { %595 = vmatmul.mubr.bf16.gmra.mxu0 %v1803_v2  ;;  %v2228_v2 = vld [vmem:[#allocation9 + $0x30] sm:$0xff]  }
  0x77   :  { %602 = vmatprep.mubr.bf16.mxu0 %v1806_v8  ;;  %2068 = vmatprep.subr.bf16.mxu1 %v2228_v2 }
  0x78   :  { %2069 = vmatpush3.bf16.msra.mxu1 %v2228_v2 }
  0x7e   :  { %603 = vmatmul.mubr.bf16.gmra.mxu0 %v1805_v10  ;;  %v208_v10 = vld [vmem:[#allocation3 + $0x78] sm:$0xff] }
  0x7f   :  { %610 = vmatprep.mubr.bf16.mxu0 %v1808_v11 }
  0x86   :  { %611 = vmatmul.mubr.bf16.gmra.mxu0 %v1807_v1  ;;  %v207_v1 = vld [vmem:[#allocation3 + $0x70] sm:$0xff] }
  0x87   :  { %618 = vmatprep.mubr.bf16.mxu0 %v1810_v3 }
  0x8e   :  { %619 = vmatmul.mubr.bf16.gmra.mxu0 %v1809_v13 }
  0x8f   :  { %626 = vmatprep.mubr.bf16.mxu0 %v1812_v29 }
  0x96   :  { %627 = vmatmul.mubr.bf16.gmra.mxu0 %v1811_v18 }
  0x97   :  { %634 = vmatprep.mubr.bf16.mxu0 %v1814_v38 }
  0x9e   :  { %635 = vmatmul.mubr.bf16.gmra.mxu0 %v1813_v49  ;;  %v204_v49 = vld [vmem:[#allocation3 + $0x58] sm:$0xff] }
  0xcf   :  { %v249_v12 = vpop.xlane.xlu1 %248 }
  0xd0   :  { %v243_v14 = vpop.xlane.xlu0 %242  ;;  %v291_v15 = vadd.f32 %v249_v12, %v195_v23  ;;  %v2229_v12 = vld [vmem:[#allocation9 + $0x28] sm:$0xff]  }
  0xd1   :  { %v289_v47 = vadd.f32 %v243_v14, %v193_v51  ;;  %2070 = vmatprep.subr.bf16.mxu1 %v2229_v12 }
  0xd2   :  { %308 = vst.msk [vmem:[#allocation3 + $0x10] sm:$0xff] %vm128_vm0, %v291_v15  ;;  %2071 = vmatpush3.bf16.msra.mxu1 %v2229_v12 }
  0xd3   :  { %306 = vst.msk [vmem:[#allocation3] sm:$0xff] %vm128_vm0, %v289_v47  ;;  %v252_v17 = vpop.xlane.xlu1 %251 }
  0xd4   :  { %v246_v62 = vpop.xlane.xlu0 %245  ;;  %v292_v7 = vadd.f32 %v252_v17, %v196_v56 }
  0xd5   :  { %v290_v19 = vadd.f32 %v246_v62, %v194_v16  ;;  %v2230_v62 = vld [vmem:[#allocation9 + $0x20] sm:$0xff]  }
  0xd6   :  { %309 = vst.msk [vmem:[#allocation3 + $0x18] sm:$0xff] %vm128_vm0, %v292_v7  ;;  %2072 = vmatprep.subr.bf16.mxu1 %v2230_v62 }
  0xd7   :  { %307 = vst.msk [vmem:[#allocation3 + $0x8] sm:$0xff] %vm128_vm0, %v290_v19  ;;  %v258_v22 = vpop.xlane.xlu1 %257  ;;  %2073 = vmatpush3.bf16.msra.mxu1 %v2230_v62 }
  0xd8   :  { %v255_v24 = vpop.xlane.xlu0 %254  ;;  %v294_v25 = vadd.f32 %v258_v22, %v198_v20 }
  0xd9   :  { %v293_v26 = vadd.f32 %v255_v24, %v197_v21  ;;  %v680_v34 = vld [vmem:[#allocation3 + $0x10] sm:$0xff] }
  0xda   :  { %v678_v30 = vld [vmem:[#allocation3] sm:$0xff]  ;;  %311 = vst.msk [vmem:[#allocation3 + $0x28] sm:$0xff] %vm128_vm0, %v294_v25  ;;  %v696_v42 = vmax.f32 %v680_v34, 1e-24  ;;  %v2231_v25 = vld [vmem:[#allocation9 + $0x18] sm:$0xff]  }
  0xdb   :  { %310 = vst.msk [vmem:[#allocation3 + $0x20] sm:$0xff] %vm128_vm0, %v293_v26  ;;  %v694_v31 = vmax.f32 %v678_v30, 1e-24  ;;  %v264_v32 = vpop.xlane.xlu1 %263  ;;  %2074 = vmatprep.subr.bf16.mxu1 %v2231_v25 }
  0xdc   :  { %v261_v33 = vpop.xlane.xlu0 %260  ;;  %v296_v35 = vadd.f32 %v264_v32, %v200_v27  ;;  %2075 = vmatpush3.bf16.msra.mxu1 %v2231_v25  ;;  %v2232_v32 = vld [vmem:[#allocation9 + $0x10] sm:$0xff]  }
  0xdd   :  { %v295_v36 = vadd.f32 %v261_v33, %v199_v28  ;;  %2251 = vrsqrt.f32 %v694_v31  ;;  %v681_v45 = vld [vmem:[#allocation3 + $0x18] sm:$0xff]  ;;  %2076 = vmatprep.subr.bf16.mxu1 %v2232_v32 }
  0xde   :  { %v679_v39 = vld [vmem:[#allocation3 + $0x8] sm:$0xff]  ;;  %313 = vst.msk [vmem:[#allocation3 + $0x38] sm:$0xff] %vm128_vm0, %v296_v35  ;;  %v697_v52 = vmax.f32 %v681_v45, 1e-24 }
  0xdf   :  { %312 = vst.msk [vmem:[#allocation3 + $0x30] sm:$0xff] %vm128_vm0, %v295_v36  ;;  %v695_v41 = vmax.f32 %v679_v39, 1e-24  ;;  %v270_v43 = vpop.xlane.xlu1 %269 }
  0xe0   :  { %v267_v44 = vpop.xlane.xlu0 %266  ;;  %v298_v46 = vadd.f32 %v270_v43, %v202_v37  ;;  %2077 = vmatpush3.bf16.msra.mxu1 %v2232_v32  ;;  %v2233_v37 = vld [vmem:[#allocation9 + $0x8] sm:$0xff]   ;;  %v2234_v43 = vld [vmem:[#allocation9] sm:$0xff]  }
  0xe1   :  { %2253 = vrsqrt.f32 %v695_v41  ;;  %v297_v48 = vadd.f32 %v267_v44, %v201_v40  ;;  %v683_v5 = vld [vmem:[#allocation3 + $0x28] sm:$0xff]  ;;  %2078 = vmatprep.subr.bf16.mxu1 %v2233_v37 }
  0xe2   :  { %315 = vst.msk [vmem:[#allocation3 + $0x48] sm:$0xff] %vm128_vm0, %v298_v46  ;;  %2255 = vrsqrt.f32 %v696_v42  ;;  %v682_v55 = vld [vmem:[#allocation3 + $0x20] sm:$0xff]  ;;  %v699_v13 = vmax.f32 %v683_v5, 1e-24 }
  0xe3   :  { %314 = vst.msk [vmem:[#allocation3 + $0x40] sm:$0xff] %vm128_vm0, %v297_v48  ;;  %v276_v53 = vpop.xlane.xlu1 %275  ;;  %2257 = vrsqrt.f32 %v697_v52  ;;  %v698_v63 = vmax.f32 %v682_v55, 1e-24 }
  0xe4   :  { %v273_v54 = vpop.xlane.xlu0 %272  ;;  %v300_v57 = vadd.f32 %v276_v53, %v204_v49  ;;  %2079 = vmatpush3.bf16.msra.mxu1 %v2233_v37 }
  0xe5   :  { %v299_v58 = vadd.f32 %v273_v54, %v203_v50  ;;  %2259 = vrsqrt.f32 %v698_v63  ;;  %v685_v17 = vld [vmem:[#allocation3 + $0x38] sm:$0xff]  ;;  %2080 = vmatprep.subr.bf16.mxu1 %v2234_v43 }
  0xe6   :  { %317 = vst.msk [vmem:[#allocation3 + $0x58] sm:$0xff] %vm128_vm0, %v300_v57  ;;  %v684_v38 = vld [vmem:[#allocation3 + $0x30] sm:$0xff]  ;;  %v701_v20 = vmax.f32 %v685_v17, 1e-24  ;;  %v2809_v50 = vld [vmem:[#allocation10 + $0x38] sm:$0xff]  }
  0xe7   :  { %316 = vst.msk [vmem:[#allocation3 + $0x50] sm:$0xff] %vm128_vm0, %v299_v58  ;;  %v282_v0 = vpop.xlane.xlu1 %281  ;;  %v700_v56 = vmax.f32 %v684_v38, 1e-24 }
  0xe8   :  { %v279_v4 = vpop.xlane.xlu0 %278  ;;  %v302_v6 = vadd.f32 %v282_v0, %v206_v60  ;;  %2081 = vmatpush3.bf16.msra.mxu1 %v2234_v43 }
  0xe9   :  { %v301_v9 = vadd.f32 %v279_v4, %v205_v61  ;;  %v687_v11 = vld [vmem:[#allocation3 + $0x48] sm:$0xff]  ;;  %2098 = vmatprep.subr.bf16.mxu1 %v2809_v50 }
  0xea   :  { %v2252_v8 = vpop.eup %2251  ;;  %319 = vst.msk [vmem:[#allocation3 + $0x68] sm:$0xff] %vm128_vm0, %v302_v6  ;;  %v703_v3 = vmax.f32 %v687_v11, 1e-24  ;;  %v686_v22 = vld [vmem:[#allocation3 + $0x40] sm:$0xff]  ;;  %v2818_v11 = vld [vmem:[#allocation12 + $0x38] sm:$0xff]  }
  0xeb   :  { %744 = vperm.xlu0 %2193, %v2252_v8   ;;  %318 = vst.msk [vmem:[#allocation3 + $0x60] sm:$0xff] %vm128_vm0, %v301_v9  ;;  %v288_v29 = vpop.xlane.xlu1 %287  ;;  %v702_v27 = vmax.f32 %v686_v22, 1e-24  ;;  %2130 = vmatprep.subr.bf16.mxu0 %v2818_v11 }
  0xec   :  { %v285_v18 = vpop.xlane.xlu0 %284  ;;  %v304_v23 = vadd.f32 %v288_v29, %v208_v10  ;;  %2261 = vrsqrt.f32 %v703_v3  ;;  %2131 = vmatpush3.bf16.msra.mxu0 %v2818_v11 }
  0xed   :  { %v303_v51 = vadd.f32 %v285_v18, %v207_v1  ;;  %v689_v15 = vld [vmem:[#allocation3 + $0x58] sm:$0xff]  ;;  %2263 = vrsqrt.f32 %v699_v13  ;;  %v2820_v1 = vld [vmem:[#allocation12 + $0x30] sm:$0xff]   ;;  %v2827_v13 = vld [vmem:[#allocation12 + $0x28] sm:$0xff]  }
  0xee   :  { %v2254_v14 = vpop.eup %2253  ;;  %321 = vst.msk [vmem:[#allocation3 + $0x78] sm:$0xff] %vm128_vm0, %v304_v23  ;;  %v705_v47 = vmax.f32 %v689_v15, 1e-24  ;;  %v688_v30 = vld [vmem:[#allocation3 + $0x50] sm:$0xff]  ;;  %2132 = vmatprep.subr.bf16.mxu0 %v2820_v1  ;;  %v2833_v18 = vld [vmem:[#allocation12 + $0x20] sm:$0xff]   ;;  %v2837_v23 = vld [vmem:[#allocation12 + $0x18] sm:$0xff]  }
  0xef   :  { %749 = vperm.xlu1 %2194, %v2254_v14   ;;  %320 = vst.msk [vmem:[#allocation3 + $0x70] sm:$0xff] %vm128_vm0, %v303_v51  ;;  %v2256_v16 = vpop.eup %2255  ;;  %v704_v33 = vmax.f32 %v688_v30, 1e-24 }
  0xf0   :  { %2265 = vrsqrt.f32 %v705_v47  ;;  %v2258_v21 = vpop.eup %2257  ;;  %2133 = vmatpush3.bf16.msra.mxu0 %v2820_v1 }
  0xf1   :  { %v691_v7 = vld [vmem:[#allocation3 + $0x68] sm:$0xff]  ;;  %2267 = vrsqrt.f32 %v700_v56  ;;  %2134 = vmatprep.subr.bf16.mxu0 %v2827_v13 }
  0xf2   :  { %v707_v19 = vmax.f32 %v691_v7, 1e-24  ;;  %v2260_v28 = vpop.eup %2259  ;;  %v690_v35 = vld [vmem:[#allocation3 + $0x60] sm:$0xff] }
  0xf3   :  { %754 = vperm.xlu1 %2194, %v2256_v16   ;;  %v706_v39 = vmax.f32 %v690_v35, 1e-24  ;;  %v2849_v16 = vld [vmem:[%s3153_s2] ss:$0 sm:$0xff] }
  0xf4   :  { %2269 = vrsqrt.f32 %v707_v19  ;;  %2135 = vmatpush3.bf16.msra.mxu0 %v2827_v13 }
  0xf5   :  { %v693_v24 = vld [vmem:[#allocation3 + $0x78] sm:$0xff]  ;;  %2271 = vrsqrt.f32 %v701_v20  ;;  %2136 = vmatprep.subr.bf16.mxu0 %v2833_v18 }
  0xf6   :  { %v709_v26 = vmax.f32 %v693_v24, 1e-24  ;;  %v692_v41 = vld [vmem:[#allocation3 + $0x70] sm:$0xff] }
  0xf7   :  { %759 = vperm.xlu1 %2194, %v2258_v21   ;;  %v708_v44 = vmax.f32 %v692_v41, 1e-24 }
  0xf8   :  { %2273 = vrsqrt.f32 %v709_v26  ;;  %2137 = vmatpush3.bf16.msra.mxu0 %v2833_v18 }
  0xf9   :  { %v2262_v31 = vpop.eup %2261  ;;  %2275 = vrsqrt.f32 %v702_v27  ;;  %2138 = vmatprep.subr.bf16.mxu0 %v2837_v23 }
  0xfa   :  { %789 = vperm.xlu0 %2193, %v2262_v31   ;;  %v2264_v34 = vpop.eup %2263  ;;  %2277 = vrsqrt.f32 %v704_v33 }
  0xfb   :  { %764 = vperm.xlu1 %2194, %v2260_v28   ;;  %2279 = vrsqrt.f32 %v706_v39 }
  0xfc   :  { %2281 = vrsqrt.f32 %v708_v44  ;;  %2139 = vmatpush3.bf16.msra.mxu0 %v2837_v23 }
  0xfd   :  { %v2266_v36 = vpop.eup %2265 }
  0xfe   :  { %799 = vperm.xlu0 %2193, %v2266_v36   ;;  %v2268_v40 = vpop.eup %2267 }
  0xff   :  { %769 = vperm.xlu1 %2194, %v2264_v34  }
 0x101   :  { %v2270_v42 = vpop.eup %2269 }
 0x102   :  { %809 = vperm.xlu0 %2193, %v2270_v42   ;;  %v2272_v45 = vpop.eup %2271 }
 0x103   :  { %774 = vperm.xlu1 %2194, %v2268_v40  }
 0x105   :  { %v2274_v46 = vpop.eup %2273 }
 0x106   :  { %819 = vperm.xlu0 %2193, %v2274_v46   ;;  %v2276_v48 = vpop.eup %2275 }
 0x107   :  { %779 = vperm.xlu1 %2194, %v2272_v45   ;;  %v2278_v49 = vpop.eup %2277 }
 0x108   :  { %v2280_v52 = vpop.eup %2279 }
 0x109   :  { %v2282_v53 = vpop.eup %2281 }
 0x10b   :  { %784 = vperm.xlu1 %2194, %v2276_v48  }
 0x10f   :  { %794 = vperm.xlu1 %2194, %v2278_v49  }
 0x113   :  { %804 = vperm.xlu1 %2194, %v2280_v52  }
 0x117   :  { %814 = vperm.xlu1 %2194, %v2282_v53  }
 0x126   :  { %v1970_v54 = vpop.f32.mrf.mxu0 }
 0x128   :  { %v1971_v55 = vpop.f32.mrf.mxu0 }
 0x129   :  { %v1972_v47 = vadd.f32 %v1971_v55, %v1970_v54 }
 0x12a   :  { %v1973_v57 = vpop.f32.mrf.mxu0 }
 0x12c   :  { %v1974_v58 = vpop.f32.mrf.mxu0 }
 0x12d   :  { %v1975_v7 = vadd.f32 %v1974_v58, %v1973_v57 }
 0x12e   :  { %v1976_v59 = vpop.f32.mrf.mxu0 }
 0x130   :  { %v1977_v60 = vpop.f32.mrf.mxu0 }
 0x131   :  { %v1978_v24 = vadd.f32 %v1977_v60, %v1976_v59 }
 0x132   :  { %v1979_v61 = vpop.f32.mrf.mxu0 }
 0x134   :  { %v1980_v63 = vpop.f32.mrf.mxu0 }
 0x135   :  { %v1981_v30 = vadd.f32 %v1980_v63, %v1979_v61 }
 0x136   :  { %v1982_v0 = vpop.f32.mrf.mxu0 }
 0x138   :  { %v1983_v4 = vpop.f32.mrf.mxu0 }
 0x139   :  { %v1984_v35 = vadd.f32 %v1983_v4, %v1982_v0 }
 0x13a   :  { %v1985_v5 = vpop.f32.mrf.mxu0 }
 0x13c   :  { %v1986_v6 = vpop.f32.mrf.mxu0 }
 0x13d   :  { %v1987_v41 = vadd.f32 %v1986_v6, %v1985_v5 }
 0x13e   :  { %v2812_v9 = vpop.f32.mrf.mxu0 }
 0x140   :  { %v1989_v2 = vpop.f32.mrf.mxu0 }
 0x141   :  { %v1990_v52 = vadd.f32 %v1989_v2, %v2812_v9 }
 0x142   :  { %v2814_v8 = vpop.f32.mrf.mxu0 }
 0x144   :  { %v2816_v10 = vpop.f32.mrf.mxu0 }
 0x145   :  { %v1993_v61 = vadd.f32 %v2816_v10, %v2814_v8 }
 0x146   :  { %v2824_v3 = vpop.f32.mrf.mxu0 }
 0x148   :  { %v2830_v29 = vpop.f32.mrf.mxu0 }
 0x14a   :  { %v1997_v38 = vpop.f32.mrf.mxu0 }
 0x14c   :  { %v1998_v51 = vpop.f32.mrf.mxu0 }
 0x14d   :  { %v1999_v60 = vadd.f32 %v1998_v51, %v1997_v38  ;;  %v2236_v38 = vld [vmem:[#allocation10 + $0x30] sm:$0xff]  }
 0x14e   :  { %v2842_v12 = vpop.f32.mrf.mxu0 }
 0x150   :  { %v2844_v14 = vpop.f32.mrf.mxu0 }
 0x152   :  { %v2003_v15 = vpop.f32.mrf.mxu0 }
 0x154   :  { %v2004_v62 = vpop.f32.mrf.mxu0 }
 0x155   :  { %v2005_v63 = vadd.f32 %v2004_v62, %v2003_v15 }
 0x156   :  { %v2852_v22 = vpop.f32.mrf.mxu0 }
 0x158   :  { %v2855_v28 = vpop.f32.mrf.mxu0 }
 0x15a   :  { %v2009_v34 = vpop.f32.mrf.mxu0 }
 0x15c   :  { %v2010_v40 = vpop.f32.mrf.mxu0 }
 0x15d   :  { %v2011_v10 = vadd.f32 %v2010_v40, %v2009_v34  ;;  %v2238_v34 = vld [vmem:[#allocation10 + $0x20] sm:$0xff]  }
 0x15e   :  { %v2860_v46 = vpop.f32.mrf.mxu0 }
 0x160   :  { %v2013_v58 = vpop.f32.mrf.mxu0 }
 0x161   :  { %v2014_v40 = vadd.f32 %v2013_v58, %v2860_v46 }
 0x162   :  { %v2015_v9 = vpop.f32.mrf.mxu0 }
 0x164   :  { %v2016_v62 = vpop.f32.mrf.mxu0 }
 0x166   :  { %v745_v56 = vpop.permute.xlu0 %744 }
 0x167   :  { %v822_v17 = vmul.f32 %v1972_v47, %v745_v56  ;;  %v1996_v56 = vadd.f32 %v2830_v29, %v2824_v3  ;;  %v2002_v3 = vadd.f32 %v2844_v14, %v2842_v12 }
 0x169   :  { %v845_v19 = vadd.f32 %v2849_v16, %v822_v17 }
 0x16a   :  { %v750_v20 = vpop.permute.xlu1 %749 }
 0x16b   :  { %v823_v21 = vmul.f32 %v1975_v7, %v750_v20  ;;  %2283 = vtanh.f32 %v845_v19 }
 0x16d   :  { %v846_v25 = vadd.f32 %v2849_v16, %v823_v21  ;;  %v2237_v21 = vld [vmem:[#allocation10 + $0x28] sm:$0xff]  }
 0x16e   :  { %v755_v26 = vpop.permute.xlu1 %754 }
 0x16f   :  { %2285 = vtanh.f32 %v846_v25  ;;  %v824_v27 = vmul.f32 %v1978_v24, %v755_v26  ;;  %v2017_v26 = vadd.f32 %v2016_v62, %v2015_v9 }
 0x171   :  { %v847_v31 = vadd.f32 %v2849_v16, %v824_v27 }
 0x172   :  { %v760_v32 = vpop.permute.xlu1 %759 }
 0x173   :  { %v825_v33 = vmul.f32 %v1981_v30, %v760_v32  ;;  %2287 = vtanh.f32 %v847_v31 }
 0x175   :  { %v848_v36 = vadd.f32 %v2849_v16, %v825_v33  ;;  %v790_v42 = vpop.permute.xlu0 %789 }
 0x176   :  { %v765_v37 = vpop.permute.xlu1 %764  ;;  %v831_v0 = vmul.f32 %v1999_v60, %v790_v42 }
 0x177   :  { %2289 = vtanh.f32 %v848_v36  ;;  %v826_v39 = vmul.f32 %v1984_v35, %v765_v37 }
 0x178   :  { %v2284_v45 = vpop.eup %2283  ;;  %v854_v8 = vadd.f32 %v2849_v16, %v831_v0 }
 0x179   :  { %v849_v43 = vadd.f32 %v2849_v16, %v826_v39  ;;  %v800_v57 = vpop.permute.xlu0 %799 }
 0x17a   :  { %v770_v44 = vpop.permute.xlu1 %769  ;;  %v833_v51 = vmul.f32 %v2005_v63, %v800_v57  ;;  %v2241_v57 = vld [vmem:[#allocation10 + $0x8] sm:$0xff]  }
 0x17b   :  { %v827_v48 = vmul.f32 %v1987_v41, %v770_v44  ;;  %2291 = vtanh.f32 %v849_v43 }
 0x17c   :  { %v2286_v49 = vpop.eup %2285  ;;  %v856_v24 = vadd.f32 %v2849_v16, %v833_v51 }
 0x17d   :  { %v850_v53 = vadd.f32 %v2849_v16, %v827_v48  ;;  %v2864_v54 = vpack.c.bf16 %v2286_v49, %v2284_v45  ;;  %v810_v17 = vpop.permute.xlu0 %809 }
 0x17e   :  { %v775_v55 = vpop.permute.xlu1 %774  ;;  %v835_v25 = vmul.f32 %v2011_v10, %v810_v17 }
 0x17f   :  { %2293 = vtanh.f32 %v850_v53  ;;  %v828_v59 = vmul.f32 %v1990_v52, %v775_v55  ;;  %2082 = vmatprep.mubr.bf16.mxu1 %v2864_v54  ;;  %v2240_v52 = vld [vmem:[#allocation10 + $0x10] sm:$0xff]  }
 0x180   :  { %v2288_v6 = vpop.eup %2287  ;;  %v858_v35 = vadd.f32 %v2849_v16, %v835_v25 }
 0x181   :  { %v851_v4 = vadd.f32 %v2849_v16, %v828_v59  ;;  %v820_v31 = vpop.permute.xlu0 %819 }
 0x182   :  { %v780_v5 = vpop.permute.xlu1 %779  ;;  %v837_v36 = vmul.f32 %v2017_v26, %v820_v31 }
 0x183   :  { %v829_v2 = vmul.f32 %v1993_v61, %v780_v5  ;;  %2295 = vtanh.f32 %v851_v4  ;;  %v2242_v61 = vld [vmem:[#allocation10] sm:$0xff]  }
 0x184   :  { %v2290_v47 = vpop.eup %2289 }
 0x185   :  { %v852_v7 = vadd.f32 %v2849_v16, %v829_v2  ;;  %v2873_v19 = vpack.c.bf16 %v2290_v47, %v2288_v6 }
 0x186   :  { %v785_v15 = vpop.permute.xlu1 %784 }
 0x187   :  { %2297 = vtanh.f32 %v852_v7  ;;  %v830_v20 = vmul.f32 %v1996_v56, %v785_v15  ;;  %2083 = vmatmul.mubr.bf16.vlgmr.msra.gmra.mxu1 %v2873_v19 }
 0x188   :  { %2099 = vmatpush3.bf16.msra.mxu1 %v2809_v50  ;;  %2299 = vtanh.f32 %v854_v8  ;;  %v2292_v30 = vpop.eup %2291  ;;  %v2008_v50 = vadd.f32 %v2855_v28, %v2852_v22  ;;  %v2239_v22 = vld [vmem:[#allocation10 + $0x18] sm:$0xff]   ;;  %v860_v28 = vadd.f32 %v2849_v16, %v837_v36 }
 0x189   :  { %v853_v29 = vadd.f32 %v2849_v16, %v830_v20  ;;  %2100 = vmatprep.subr.bf16.mxu1 %v2236_v38 }
 0x18a   :  { %v795_v27 = vpop.permute.xlu1 %794 }
 0x18b   :  { %2301 = vtanh.f32 %v853_v29  ;;  %v832_v32 = vmul.f32 %v2002_v3, %v795_v27 }
 0x18c   :  { %v2294_v33 = vpop.eup %2293  ;;  %2101 = vmatpush3.bf16.msra.mxu1 %v2236_v38  ;;  %2303 = vtanh.f32 %v856_v24 }
 0x18d   :  { %v855_v12 = vadd.f32 %v2849_v16, %v832_v32  ;;  %v879_v14 = vpack.c.bf16 %v2294_v33, %v2292_v30  ;;  %2102 = vmatprep.subr.bf16.mxu1 %v2237_v21 }
 0x18e   :  { %v805_v37 = vpop.permute.xlu1 %804 }
 0x18f   :  { %2305 = vtanh.f32 %v855_v12  ;;  %v834_v39 = vmul.f32 %v2008_v50, %v805_v37  ;;  %2086 = vmatprep.mubr.bf16.mxu1 %v879_v14 }
 0x190   :  { %2103 = vmatpush3.bf16.msra.mxu1 %v2237_v21  ;;  %2307 = vtanh.f32 %v858_v35  ;;  %v2296_v43 = vpop.eup %2295 }
 0x191   :  { %v857_v41 = vadd.f32 %v2849_v16, %v834_v39  ;;  %2104 = vmatprep.subr.bf16.mxu1 %v2238_v34 }
 0x192   :  { %v815_v42 = vpop.permute.xlu1 %814 }
 0x193   :  { %2309 = vtanh.f32 %v857_v41  ;;  %v836_v44 = vmul.f32 %v2014_v40, %v815_v42 }
 0x194   :  { %v2298_v45 = vpop.eup %2297  ;;  %2105 = vmatpush3.bf16.msra.mxu1 %v2238_v34  ;;  %2311 = vtanh.f32 %v860_v28 }
 0x195   :  { %v859_v48 = vadd.f32 %v2849_v16, %v836_v44  ;;  %v880_v49 = vpack.c.bf16 %v2298_v45, %v2296_v43  ;;  %2106 = vmatprep.subr.bf16.mxu1 %v2239_v22  ;;  %v2300_v46 = vpop.eup %2299 }
 0x197   :  { %2313 = vtanh.f32 %v859_v48  ;;  %2087 = vmatmul.mubr.bf16.gmra.mxu1 %v880_v49 }
 0x198   :  { %v2302_v53 = vpop.eup %2301  ;;  %2107 = vmatpush3.bf16.msra.mxu1 %v2239_v22  ;;  %v2964_v22 = vld [vmem:[%s3157_s6] ss:$0 sm:$0xff]  ;;  %s2582_s6 = smov [#allocation14]  }
 0x199   :  { %v881_v55 = vpack.c.bf16 %v2300_v46, %v2302_v53  ;;  %2108 = vmatprep.subr.bf16.mxu1 %v2240_v52  ;;  %v2304_v58 = vpop.eup %2303  ;;  %s1750_s15 = sshll.u32 %s2582_s6, 4  ;;  %s1751_s15 = int_to_ptr.vmem [resolvable:$true] %s1750_s15 }
 0x19a   :  { %s2479_s19 = scalar_lea.vmem %s1751_s15, 2048  ;;  %p2484_p12 = scmp.lt.s32.totalorder %s1751_s15, %s1751_s15 }
 0x19b   :  { %2090 = vmatprep.mubr.bf16.mxu1 %v881_v55  ;;  %p2480_p11 = scmp.ne.s32.totalorder %s1751_s15, %s2479_s19  ;;  %p2485_p13 = scmp.lt.s32.totalorder %s2479_s19, %s2479_s19 }
 0x19c   :  { %v2306_v59 = vpop.eup %2305  ;;  %2109 = vmatpush3.bf16.msra.mxu1 %v2240_v52 }
 0x19d   :  { %v882_v60 = vpack.c.bf16 %v2304_v58, %v2306_v59  ;;  %2110 = vmatprep.subr.bf16.mxu1 %v2241_v57  ;;  %v2308_v16 = vpop.eup %2307  ;;  %p2486_p0 = por %p2485_p13, %p2484_p12 }
 0x19f   :  { %2091 = vmatmul.mubr.bf16.gmra.mxu1 %v882_v60  ;;  %p2487_p1 = pnand %p2486_p0, %p2480_p11 }
 0x1a0   :  { %v2310_v63 = vpop.eup %2309  ;;  %2111 = vmatpush3.bf16.msra.mxu1 %v2241_v57 }
 0x1a1   :  { %v883_v0 = vpack.c.bf16 %v2308_v16, %v2310_v63  ;;  %2112 = vmatprep.subr.bf16.mxu1 %v2242_v61  ;;  %v2312_v4 = vpop.eup %2311 }
 0x1a3   :  { %2094 = vmatprep.mubr.bf16.mxu1 %v883_v0 }
 0x1a4   :  { %v2314_v5 = vpop.eup %2313  ;;  %2113 = vmatpush3.bf16.msra.mxu1 %v2242_v61 }
 0x1a5   :  { %v884_v6 = vpack.c.bf16 %v2312_v4, %v2314_v5  ;;  %2162 = vmatprep.subr.bf16.mxu1 %v2818_v11 }
 0x1a7   :  { %2095 = vmatmul.mubr.bf16.gmra.mxu1 %v884_v6 }
 0x1a8   :  { %2114 = vmatprep.mubr.bf16.mxu1 %v2864_v54 }
 0x1af   :  { %2115 = vmatmul.mubr.bf16.vlgmr.msra.gmra.mxu1 %v2873_v19 }
 0x1b0   :  { %2118 = vmatprep.mubr.bf16.mxu1 %v879_v14  ;;  %2170 = vmatpush3.bf16.msra.mxu1 %v2818_v11  ;;  %v2248_v11 = vld [vmem:[#allocation12 + $0x10] sm:$0xff]  }
 0x1b1   :  { %2163 = vmatprep.subr.bf16.mxu1 %v2820_v1  ;;  %2140 = vmatprep.subr.bf16.mxu0 %v2248_v11 }
 0x1b2   :  { %2141 = vmatpush3.bf16.msra.mxu0 %v2248_v11 }
 0x1b4   :  { %2171 = vmatpush3.bf16.msra.mxu1 %v2820_v1  ;;  %v2249_v1 = vld [vmem:[#allocation12 + $0x8] sm:$0xff]  }
 0x1b5   :  { %2164 = vmatprep.subr.bf16.mxu1 %v2827_v13  ;;  %2142 = vmatprep.subr.bf16.mxu0 %v2249_v1 }
 0x1b6   :  { %2143 = vmatpush3.bf16.msra.mxu0 %v2249_v1 }
 0x1b7   :  { %2119 = vmatmul.mubr.bf16.gmra.mxu1 %v880_v49 }
 0x1b8   :  { %2122 = vmatprep.mubr.bf16.mxu1 %v881_v55  ;;  %2172 = vmatpush3.bf16.msra.mxu1 %v2827_v13  ;;  %v2250_v13 = vld [vmem:[#allocation12] sm:$0xff]  }
 0x1b9   :  { %2165 = vmatprep.subr.bf16.mxu1 %v2833_v18  ;;  %2144 = vmatprep.subr.bf16.mxu0 %v2250_v13 }
 0x1ba   :  { %2145 = vmatpush3.bf16.msra.mxu0 %v2250_v13 }
 0x1bc   :  { %2173 = vmatpush3.bf16.msra.mxu1 %v2833_v18  ;;  %v1832_v18 = vld [vmem:[%s3155_s4] ss:$0 sm:$0xff] }
 0x1bd   :  { %2166 = vmatprep.subr.bf16.mxu1 %v2837_v23 }
 0x1bf   :  { %2123 = vmatmul.mubr.bf16.gmra.mxu1 %v882_v60 }
 0x1c0   :  { %2126 = vmatprep.mubr.bf16.mxu1 %v883_v0  ;;  %2174 = vmatpush3.bf16.msra.mxu1 %v2837_v23 }
 0x1c1   :  { %2167 = vmatprep.subr.bf16.mxu1 %v2248_v11 }
 0x1c4   :  { %2175 = vmatpush3.bf16.msra.mxu1 %v2248_v11 }
 0x1c5   :  { %2168 = vmatprep.subr.bf16.mxu1 %v2249_v1 }
 0x1c7   :  { %2127 = vmatmul.mubr.bf16.gmra.mxu1 %v884_v6 }
 0x1c8   :  { %2176 = vmatpush3.bf16.msra.mxu1 %v2249_v1 }
 0x1c9   :  { %2169 = vmatprep.subr.bf16.mxu1 %v2250_v13 }
 0x1cc   :  { %2177 = vmatpush3.bf16.msra.mxu1 %v2250_v13 }
 0x247   :  { %v2084_v23 = vpop.f32.mrf.mxu1 }
 0x248   :  { %v2905_v54 = vadd.f32 %v2084_v23, %v1832_v18 }
 0x249   :  { %v990_v9 = vpop.f32.mrf.mxu1 }
 0x24a   :  { %1607 = vst [vmem:[#allocation13 + $0x10] sm:$0xff] %v2905_v54  ;;  %v2908_v2 = vadd.f32 %v1832_v18, %v990_v9 }
 0x24b   :  { %v2085_v47 = vpop.f32.mrf.mxu1 }
 0x24c   :  { %1605 = vst [vmem:[#allocation13] sm:$0xff] %v2908_v2  ;;  %v2911_v56 = vadd.f32 %v2085_v47, %v1832_v18 }
 0x24d   :  { %v993_v17 = vpop.f32.mrf.mxu1 }
 0x24e   :  { %1608 = vst [vmem:[#allocation13 + $0x18] sm:$0xff] %v2911_v56  ;;  %v2914_v7 = vadd.f32 %v1832_v18, %v993_v17  ;;  %v1414_v38 = vpack.c.bf16 %v2911_v56, %v2905_v54 }
 0x250   :  { %1606 = vst [vmem:[#allocation13 + $0x8] sm:$0xff] %v2914_v7  ;;  %v1413_v19 = vpack.c.bf16 %v2914_v7, %v2908_v2 }
 0x252   :  { %2146 = vmatprep.mubr.bf16.mxu0 %v1413_v19 }
 0x253   :  { %2147 = vmatmul.mubr.bf16.vlgmr.msra.gmra.mxu0 %v1414_v38 }
 0x257   :  { %v2088_v8 = vpop.f32.mrf.mxu1 }
 0x258   :  { %v2921_v10 = vadd.f32 %v2088_v8, %v1832_v18 }
 0x259   :  { %v1006_v51 = vpop.f32.mrf.mxu1 }
 0x25a   :  { %1611 = vst [vmem:[#allocation13 + $0x30] sm:$0xff] %v2921_v10  ;;  %v2924_v15 = vadd.f32 %v1832_v18, %v1006_v51 }
 0x25b   :  { %v2089_v62 = vpop.f32.mrf.mxu1 }
 0x25c   :  { %1609 = vst [vmem:[#allocation13 + $0x20] sm:$0xff] %v2924_v15  ;;  %v2927_v20 = vadd.f32 %v2089_v62, %v1832_v18 }
 0x25d   :  { %v1009_v3 = vpop.f32.mrf.mxu1 }
 0x25e   :  { %1612 = vst [vmem:[#allocation13 + $0x38] sm:$0xff] %v2927_v20  ;;  %v2930_v29 = vadd.f32 %v1832_v18, %v1009_v3  ;;  %v1416_v27 = vpack.c.bf16 %v2927_v20, %v2921_v10 }
 0x25f   :  { %v2092_v21 = vpop.f32.mrf.mxu1 }
 0x260   :  { %1610 = vst [vmem:[#allocation13 + $0x28] sm:$0xff] %v2930_v29  ;;  %v2933_v24 = vadd.f32 %v2092_v21, %v1832_v18  ;;  %v1415_v25 = vpack.c.bf16 %v2930_v29, %v2924_v15 }
 0x261   :  { %v1022_v26 = vpop.f32.mrf.mxu1 }
 0x262   :  { %1615 = vst [vmem:[#allocation13 + $0x50] sm:$0xff] %v2933_v24  ;;  %v2940_v30 = vadd.f32 %v1832_v18, %v1022_v26  ;;  %2150 = vmatprep.mubr.bf16.mxu0 %v1415_v25  ;;  %v1319_v25 = vmul.f32 %v2905_v54, %v2905_v54  ;;  %v1317_v26 = vmul.f32 %v2908_v2, %v2908_v2 }
 0x263   :  { %v2093_v31 = vpop.f32.mrf.mxu1  ;;  %2151 = vmatmul.mubr.bf16.gmra.mxu0 %v1416_v27  ;;  %v3015_v27 = vmul.f32 %v2911_v56, %v2911_v56  ;;  %v3027_v2 = vmul.f32 %v2921_v10, %v2921_v10  ;;  %v3031_v56 = vmul.f32 %v2927_v20, %v2927_v20 }
 0x264   :  { %1613 = vst [vmem:[#allocation13 + $0x40] sm:$0xff] %v2940_v30  ;;  %v2943_v32 = vadd.f32 %v2093_v31, %v1832_v18 }
 0x265   :  { %v1025_v33 = vpop.f32.mrf.mxu1 }
 0x266   :  { %1616 = vst [vmem:[#allocation13 + $0x58] sm:$0xff] %v2943_v32  ;;  %v2946_v50 = vadd.f32 %v1832_v18, %v1025_v33  ;;  %v1418_v35 = vpack.c.bf16 %v2943_v32, %v2933_v24 }
 0x267   :  { %v2096_v12 = vpop.f32.mrf.mxu1 }
 0x268   :  { %1614 = vst [vmem:[#allocation13 + $0x48] sm:$0xff] %v2946_v50  ;;  %v2949_v14 = vadd.f32 %v2096_v12, %v1832_v18  ;;  %v1417_v34 = vpack.c.bf16 %v2946_v50, %v2940_v30  ;;  %v3023_v12 = vmul.f32 %v2914_v7, %v2914_v7 }
 0x269   :  { %v1038_v36 = vpop.f32.mrf.mxu1 }
 0x26a   :  { %1619 = vst [vmem:[#allocation13 + $0x70] sm:$0xff] %v2949_v14  ;;  %v2956_v37 = vadd.f32 %v1832_v18, %v1038_v36  ;;  %2154 = vmatprep.mubr.bf16.mxu1 %v1417_v34  ;;  %v3035_v36 = vmul.f32 %v2924_v15, %v2924_v15 }
 0x26b   :  { %v2097_v39 = vpop.f32.mrf.mxu1  ;;  %2155 = vmatmul.mubr.bf16.vlgmr.msra.gmra.mxu1 %v1418_v35 }
 0x26c   :  { %1617 = vst [vmem:[#allocation13 + $0x60] sm:$0xff] %v2956_v37  ;;  %v2959_v40 = vadd.f32 %v2097_v39, %v1832_v18 }
 0x26d   :  { %v1041_v41 = vpop.f32.mrf.mxu1 }
 0x26e   :  { %1620 = vst [vmem:[#allocation13 + $0x78] sm:$0xff] %v2959_v40  ;;  %v2967_v28 = vadd.f32 %v1832_v18, %v1041_v41  ;;  %v1420_v48 = vpack.c.bf16 %v2959_v40, %v2949_v14 }
 0x26f   :  { %v2116_v42 = vpop.f32.mrf.mxu1 }
 0x270   :  { %1618 = vst [vmem:[#allocation13 + $0x68] sm:$0xff] %v2967_v28  ;;  %v2971_v43 = vadd.f32 %v2116_v42, %v2964_v22  ;;  %v1419_v44 = vpack.c.bf16 %v2967_v28, %v2956_v37  ;;  %v3043_v42 = vmul.f32 %v2930_v29, %v2930_v29 }
 0x271   :  { %v1158_v45 = vpop.f32.mrf.mxu1 }
 0x272   :  { %v1223_v49 = vmul.f32 0.5, %v2971_v43  ;;  %v2979_v52 = vadd.f32 %v2964_v22, %v1158_v45  ;;  %2158 = vmatprep.mubr.bf16.mxu1 %v1419_v44  ;;  %v1271_v44 = vsub.f32 0.0, %v2971_v43 }
 0x273   :  { %v2117_v46 = vpop.f32.mrf.mxu1  ;;  %2159 = vmatmul.mubr.bf16.gmra.mxu1 %v1420_v48 }
 0x274   :  { %v1241_v53 = vmul.f32 1.442695, %v1223_v49  ;;  %v1221_v55 = vmul.f32 0.5, %v2979_v52  ;;  %v2983_v57 = vadd.f32 %v2117_v46, %v2964_v22  ;;  %v1269_v20 = vsub.f32 0.0, %v2979_v52 }
 0x275   :  { %v1161_v58 = vpop.f32.mrf.mxu1 }
 0x276   :  { %2315 = vpow2.f32 %v1241_v53  ;;  %v1237_v59 = vmul.f32 1.442695, %v1221_v55  ;;  %v1224_v60 = vmul.f32 0.5, %v2983_v57  ;;  %v2987_v61 = vadd.f32 %v2964_v22, %v1161_v58 }
 0x277   :  { %v2120_v16 = vpop.f32.mrf.mxu1  ;;  %v1272_v48 = vsub.f32 0.0, %v2983_v57 }
 0x278   :  { %2317 = vpow2.f32 %v1237_v59  ;;  %v1243_v63 = vmul.f32 1.442695, %v1224_v60  ;;  %v2990_v0 = vadd.f32 %v2120_v16, %v2964_v22  ;;  %v1222_v4 = vmul.f32 0.5, %v2987_v61 }
 0x279   :  { %v1174_v5 = vpop.f32.mrf.mxu1  ;;  %v1270_v55 = vsub.f32 0.0, %v2987_v61 }
 0x27a   :  { %2319 = vpow2.f32 %v1243_v63  ;;  %v1227_v6 = vmul.f32 0.5, %v2990_v0  ;;  %v2995_v11 = vadd.f32 %v2964_v22, %v1174_v5  ;;  %v1239_v1 = vmul.f32 1.442695, %v1222_v4 }
 0x27b   :  { %v2121_v13 = vpop.f32.mrf.mxu1  ;;  %v1275_v52 = vsub.f32 0.0, %v2990_v0 }
 0x27c   :  { %v1249_v18 = vmul.f32 1.442695, %v1227_v6  ;;  %v1225_v23 = vmul.f32 0.5, %v2995_v11  ;;  %v2999_v9 = vadd.f32 %v2121_v13, %v2964_v22  ;;  %2321 = vpow2.f32 %v1239_v1 }
 0x27d   :  { %v1177_v47 = vpop.f32.mrf.mxu1  ;;  %v1273_v16 = vsub.f32 0.0, %v2995_v11 }
 0x27e   :  { %2323 = vpow2.f32 %v1249_v18  ;;  %v1245_v17 = vmul.f32 1.442695, %v1225_v23  ;;  %v1228_v19 = vmul.f32 0.5, %v2999_v9  ;;  %v3003_v38 = vadd.f32 %v2964_v22, %v1177_v47 }
 0x27f   :  { %v2124_v8 = vpop.f32.mrf.mxu1 }
 0x280   :  { %2325 = vpow2.f32 %v1245_v17  ;;  %v1251_v51 = vmul.f32 1.442695, %v1228_v19  ;;  %v3006_v62 = vadd.f32 %v2124_v8, %v2964_v22  ;;  %v1226_v3 = vmul.f32 0.5, %v3003_v38 }
 0x281   :  { %v1190_v21 = vpop.f32.mrf.mxu1 }
 0x282   :  { %2327 = vpow2.f32 %v1251_v51  ;;  %v1231_v31 = vmul.f32 0.5, %v3006_v62  ;;  %v3019_v33 = vadd.f32 %v2964_v22, %v1190_v21  ;;  %v1247_v35 = vmul.f32 1.442695, %v1226_v3 }
 0x283   :  { %v2316_v34 = vpop.eup %2315  ;;  %v2125_v54 = vpop.f32.mrf.mxu1  ;;  %v1276_v51 = vsub.f32 0.0, %v2999_v9 }
 0x284   :  { %1623 = vst [vmem:[#allocation14 + $0x10] sm:$0xff] %v2316_v34  ;;  %v1257_v39 = vmul.f32 1.442695, %v1231_v31  ;;  %v1229_v7 = vmul.f32 0.5, %v3019_v33  ;;  %v3039_v41 = vadd.f32 %v2125_v54, %v2964_v22  ;;  %2329 = vpow2.f32 %v1247_v35 }
 0x285   :  { %v2318_v10 = vpop.eup %2317  ;;  %v1193_v45 = vpop.f32.mrf.mxu1  ;;  %v1287_v15 = vmul.f32 %v2316_v34, %v2316_v34 }
 0x286   :  { %1621 = vst [vmem:[#allocation14] sm:$0xff] %v2318_v10  ;;  %2331 = vpow2.f32 %v1257_v39  ;;  %v1253_v49 = vmul.f32 1.442695, %v1229_v7  ;;  %v1232_v46 = vmul.f32 0.5, %v3039_v41  ;;  %v3051_v29 = vadd.f32 %v2964_v22, %v1193_v45 }
 0x287   :  { %v2320_v53 = vpop.eup %2319  ;;  %v2128_v58 = vpop.f32.mrf.mxu1  ;;  %v1303_v43 = vadd.f32 %v1287_v15, %v1271_v44  ;;  %v1285_v59 = vmul.f32 %v2318_v10, %v2318_v10  ;;  %v1274_v7 = vsub.f32 0.0, %v3003_v38  ;;  %v1279_v38 = vsub.f32 0.0, %v3006_v62 }
 0x288   :  { %1624 = vst [vmem:[#allocation14 + $0x18] sm:$0xff] %v2320_v53  ;;  %2333 = vpow2.f32 %v1253_v49  ;;  %v1259_v60 = vmul.f32 1.442695, %v1232_v46  ;;  %v3055_v57 = vadd.f32 %v2128_v58, %v2964_v22  ;;  %v1230_v63 = vmul.f32 0.5, %v3051_v29 }
 0x289   :  { %v1206_v4 = vpop.f32.mrf.mxu1  ;;  %v1335_v61 = vadd.f32 %v1319_v25, %v1303_v43  ;;  %v1301_v5 = vadd.f32 %v1285_v59, %v1269_v20  ;;  %v2322_v6 = vpop.eup %2321  ;;  %v1288_v0 = vmul.f32 %v2320_v53, %v2320_v53 }
 0x28a   :  { %2335 = vpow2.f32 %v1259_v60  ;;  %v1235_v1 = vmul.f32 0.5, %v3055_v57  ;;  %v3061_v13 = vadd.f32 %v2964_v22, %v1206_v4  ;;  %1622 = vst [vmem:[#allocation14 + $0x8] sm:$0xff] %v2322_v6  ;;  %v1255_v23 = vmul.f32 1.442695, %v1230_v63 }
 0x28b   :  { %v2324_v18 = vpop.eup %2323  ;;  %v2129_v47 = vpop.f32.mrf.mxu1  ;;  %v1852_v17 = vadd.f32 -1.0, %v1335_v61  ;;  %v1333_v19 = vadd.f32 %v1317_v26, %v1301_v5  ;;  %v1286_v8 = vmul.f32 %v2322_v6, %v2322_v6  ;;  %v1304_v15 = vadd.f32 %v1288_v0, %v1272_v48 }
 0x28c   :  { %1627 = vst [vmem:[#allocation14 + $0x30] sm:$0xff] %v2324_v18  ;;  %v1265_v3 = vmul.f32 1.442695, %v1235_v1  ;;  %v1233_v21 = vmul.f32 0.5, %v3061_v13  ;;  %v3066_v25 = vadd.f32 %v2129_v47, %v2964_v22  ;;  %2337 = vpow2.f32 %v1255_v23 }
 0x28d   :  { %v2326_v31 = vpop.eup %2325  ;;  %v1209_v34 = vpop.f32.mrf.mxu1  ;;  %v1367_v35 = vmul.f32 0.5, %v1852_v17  ;;  %v1850_v54 = vadd.f32 -1.0, %v1333_v19  ;;  %v1302_v39 = vadd.f32 %v1286_v8, %v1270_v55  ;;  %v1291_v46 = vmul.f32 %v2324_v18, %v2324_v18 }
 0x28e   :  { %1625 = vst [vmem:[#allocation14 + $0x20] sm:$0xff] %v2326_v31  ;;  %2339 = vpow2.f32 %v1265_v3  ;;  %v1261_v26 = vmul.f32 1.442695, %v1233_v21  ;;  %v1236_v10 = vmul.f32 0.5, %v3066_v25  ;;  %v3071_v44 = vadd.f32 %v2964_v22, %v1209_v34 }
 0x28f   :  { %v2328_v9 = vpop.eup %2327  ;;  %1385 = vadd.xlane.f32.xlu0 %v1367_v35  ;;  %v1365_v20 = vmul.f32 0.5, %v1850_v54  ;;  %v1334_v45 = vadd.f32 %v3023_v12, %v1302_v39  ;;  %v1336_v43 = vadd.f32 %v3015_v27, %v1304_v15  ;;  %v1307_v59 = vadd.f32 %v1291_v46, %v1275_v52 }
 0x290   :  { %1628 = vst [vmem:[#allocation14 + $0x38] sm:$0xff] %v2328_v9  ;;  %2341 = vpow2.f32 %v1261_v26  ;;  %v1267_v49 = vmul.f32 1.442695, %v1236_v10  ;;  %v1292_v53 = vmul.f32 %v2328_v9, %v2328_v9  ;;  %v1234_v55 = vmul.f32 0.5, %v3071_v44 }
 0x291   :  { %1381 = vadd.xlane.f32.xlu1 %v1365_v20  ;;  %v1851_v58 = vadd.f32 -1.0, %v1334_v45  ;;  %v2330_v22 = vpop.eup %2329  ;;  %v1289_v63 = vmul.f32 %v2326_v31, %v2326_v31  ;;  %v1853_v61 = vadd.f32 -1.0, %v1336_v43  ;;  %v1339_v62 = vadd.f32 %v3027_v2, %v1307_v59 }
 0x292   :  { %2343 = vpow2.f32 %v1267_v49  ;;  %v1308_v60 = vadd.f32 %v1292_v53, %v1276_v51  ;;  %1626 = vst [vmem:[#allocation14 + $0x28] sm:$0xff] %v2330_v22  ;;  %v1263_v48 = vmul.f32 1.442695, %v1234_v55  ;;  %v1290_v5 = vmul.f32 %v2330_v22, %v2330_v22 }
 0x293   :  { %v2332_v12 = vpop.eup %2331  ;;  %v1366_v4 = vmul.f32 0.5, %v1851_v58  ;;  %v1305_v1 = vadd.f32 %v1289_v63, %v1273_v16  ;;  %v1368_v52 = vmul.f32 0.5, %v1853_v61  ;;  %v1327_v23 = vmul.f32 %v2933_v24, %v2933_v24 }
 0x294   :  { %1631 = vst [vmem:[#allocation14 + $0x50] sm:$0xff] %v2332_v12  ;;  %v1340_v6 = vadd.f32 %v3031_v56, %v1308_v60  ;;  %v1295_v27 = vmul.f32 %v2332_v12, %v2332_v12  ;;  %2345 = vpow2.f32 %v1263_v48  ;;  %v1306_v18 = vadd.f32 %v1290_v5, %v1274_v7 }
 0x295   :  { %v2334_v0 = vpop.eup %2333  ;;  %1383 = vadd.xlane.f32.xlu0 %v1366_v4  ;;  %v1856_v47 = vadd.f32 -1.0, %v1339_v62  ;;  %v1337_v19 = vadd.f32 %v3035_v36, %v1305_v1  ;;  %v1277_v56 = vsub.f32 0.0, %v3019_v33  ;;  %1387 = vadd.xlane.f32.xlu1 %v1368_v52  ;;  %v1280_v24 = vsub.f32 0.0, %v3039_v41 }
 0x296   :  { %1629 = vst [vmem:[#allocation14 + $0x40] sm:$0xff] %v2334_v0  ;;  %v1857_v17 = vadd.f32 -1.0, %v1340_v6  ;;  %v1311_v2 = vadd.f32 %v1295_v27, %v1279_v38  ;;  %v1338_v11 = vadd.f32 %v3043_v42, %v1306_v18  ;;  %v1293_v16 = vmul.f32 %v2334_v0, %v2334_v0 }
 0x297   :  { %v2336_v8 = vpop.eup %2335  ;;  %v1371_v51 = vmul.f32 0.5, %v1856_v47  ;;  %v1854_v21 = vadd.f32 -1.0, %v1337_v19  ;;  %v1328_v36 = vmul.f32 %v2943_v32, %v2943_v32  ;;  %v1325_v33 = vmul.f32 %v2940_v30, %v2940_v30 }
 0x298   :  { %1632 = vst [vmem:[#allocation14 + $0x58] sm:$0xff] %v2336_v8  ;;  %v1372_v3 = vmul.f32 0.5, %v1857_v17  ;;  %v1343_v31 = vadd.f32 %v1327_v23, %v1311_v2  ;;  %v1855_v34 = vadd.f32 -1.0, %v1338_v11  ;;  %v1296_v35 = vmul.f32 %v2336_v8, %v2336_v8 }
 0x299   :  { %v1309_v54 = vadd.f32 %v1293_v16, %v1277_v56  ;;  %v2338_v39 = vpop.eup %2337  ;;  %1393 = vadd.xlane.f32.xlu0 %v1371_v51  ;;  %v1278_v7 = vsub.f32 0.0, %v3051_v29  ;;  %v1369_v41 = vmul.f32 0.5, %v1854_v21  ;;  %v1326_v32 = vmul.f32 %v2946_v50, %v2946_v50 }
 0x29a   :  { %1630 = vst [vmem:[#allocation14 + $0x48] sm:$0xff] %v2338_v39  ;;  %1395 = vadd.xlane.f32.xlu1 %v1372_v3  ;;  %v1860_v26 = vadd.f32 -1.0, %v1343_v31  ;;  %v1312_v10 = vadd.f32 %v1296_v35, %v1280_v24  ;;  %v1294_v9 = vmul.f32 %v2338_v39, %v2338_v39  ;;  %v1370_v49 = vmul.f32 0.5, %v1855_v34 }
 0x29b   :  { %v2340_v42 = vpop.eup %2339  ;;  %v1341_v20 = vadd.f32 %v1325_v33, %v1309_v54  ;;  %v1283_v30 = vsub.f32 0.0, %v3055_v57  ;;  %v1281_v29 = vsub.f32 0.0, %v3061_v13  ;;  %v1329_v59 = vmul.f32 %v2956_v37, %v2956_v37 }
 0x29c   :  { %1635 = vst [vmem:[#allocation14 + $0x70] sm:$0xff] %v2340_v42  ;;  %v1299_v45 = vmul.f32 %v2340_v42, %v2340_v42  ;;  %v1344_v46 = vadd.f32 %v1328_v36, %v1312_v10  ;;  %v1310_v53 = vadd.f32 %v1294_v9, %v1278_v7  ;;  %v1375_v58 = vmul.f32 0.5, %v1860_v26 }
 0x29d   :  { %v2342_v15 = vpop.eup %2341  ;;  %1389 = vadd.xlane.f32.xlu0 %v1369_v41  ;;  %v1858_v60 = vadd.f32 -1.0, %v1341_v20  ;;  %v1284_v57 = vsub.f32 0.0, %v3066_v25  ;;  %v1331_v5 = vmul.f32 %v2949_v14, %v2949_v14  ;;  %v1282_v62 = vsub.f32 0.0, %v3071_v44 }
 0x29e   :  { %1633 = vst [vmem:[#allocation14 + $0x60] sm:$0xff] %v2342_v15  ;;  %v1297_v38 = vmul.f32 %v2342_v15, %v2342_v15  ;;  %1391 = vadd.xlane.f32.xlu1 %v1370_v49  ;;  %v1861_v43 = vadd.f32 -1.0, %v1344_v46  ;;  %v1342_v22 = vadd.f32 %v1326_v32, %v1310_v53  ;;  %v1315_v12 = vadd.f32 %v1299_v45, %v1283_v30 }
 0x29f   :  { %v2344_v55 = vpop.eup %2343  ;;  %v1373_v1 = vmul.f32 0.5, %v1858_v60  ;;  %v1330_v25 = vmul.f32 %v2967_v28, %v2967_v28  ;;  %v1332_v23 = vmul.f32 %v2959_v40, %v2959_v40 }
 0x2a0   :  { %1636 = vst [vmem:[#allocation14 + $0x78] sm:$0xff] %v2344_v55  ;;  %v1313_v63 = vadd.f32 %v1297_v38, %v1281_v29  ;;  %v1300_v50 = vmul.f32 %v2344_v55, %v2344_v55  ;;  %v1376_v48 = vmul.f32 0.5, %v1861_v43  ;;  %v1859_v13 = vadd.f32 -1.0, %v1342_v22 }
 0x2a1   :  { %v2346_v4 = vpop.eup %2345  ;;  %1401 = vadd.xlane.f32.xlu0 %v1375_v58  ;;  %v1347_v0 = vadd.f32 %v1331_v5, %v1315_v12 }
 0x2a2   :  { %v1345_v61 = vadd.f32 %v1329_v59, %v1313_v63  ;;  %1634 = vst [vmem:[#allocation14 + $0x68] sm:$0xff] %v2346_v4  ;;  %1403 = vadd.xlane.f32.xlu1 %v1376_v48  ;;  %v1298_v37 = vmul.f32 %v2346_v4, %v2346_v4  ;;  %v1316_v6 = vadd.f32 %v1300_v50, %v1284_v57  ;;  %v1374_v52 = vmul.f32 0.5, %v1859_v13 }
 0x2a3   :  { %v1864_v17 = vadd.f32 -1.0, %v1347_v0 }
 0x2a4   :  { %v1862_v27 = vadd.f32 -1.0, %v1345_v61  ;;  %v1314_v18 = vadd.f32 %v1298_v37, %v1282_v62  ;;  %v1348_v44 = vadd.f32 %v1332_v23, %v1316_v6 }
 0x2a5   :  { %1397 = vadd.xlane.f32.xlu0 %v1373_v1  ;;  %v1379_v56 = vmul.f32 0.5, %v1864_v17 }
 0x2a6   :  { %v1377_v47 = vmul.f32 0.5, %v1862_v27  ;;  %1399 = vadd.xlane.f32.xlu1 %v1374_v52  ;;  %v1346_v14 = vadd.f32 %v1330_v25, %v1314_v18  ;;  %v1865_v8 = vadd.f32 -1.0, %v1348_v44 }
 0x2a8   :  { %v1863_v19 = vadd.f32 -1.0, %v1346_v14  ;;  %v1380_v11 = vmul.f32 0.5, %v1865_v8 }
 0x2a9   :  { %1405 = vadd.xlane.f32.xlu0 %v1377_v47 }
 0x2aa   :  { %v1378_v2 = vmul.f32 0.5, %v1863_v19 }
 0x2ac   :  { %1407 = vadd.xlane.f32.xlu1 %v1378_v2 }
 0x2ad   :  { %1409 = vadd.xlane.f32.xlu0 %v1379_v56 }
 0x2b0   :  { %1411 = vadd.xlane.f32.xlu1 %v1380_v11 }
 0x2b1   :  { %2490 = shalt.err (!%p2487_p1)
}
 0x2b2   :  { %1756 = dma.vmem_to_hbm [thread:$0]  %s1751_s15, 2048, %s3161_s10, [#allocation15], %s2576_s17, %s2576_s17, %s2577_s18  }
 0x2b3   :  { %s2499_s22 = scalar_lea.vmem %s1739_s1, 2048  ;;  %p2504_p3 = scmp.lt.s32.totalorder %s1739_s1, %s1739_s1 }
 0x2b4   :  { %p2500_p2 = scmp.ne.s32.totalorder %s1739_s1, %s2499_s22  ;;  %p2505_p4 = scmp.lt.s32.totalorder %s2499_s22, %s2499_s22 }
 0x2b6   :  { %p2506_p5 = por %p2505_p4, %p2504_p3 }
 0x2b8   :  { %p2507_p6 = pnand %p2506_p5, %p2500_p2 }
 0x2ba   :  { %2510 = shalt.err (!%p2507_p6)
}
 0x2bb   :  { %1744 = dma.vmem_to_hbm [thread:$0]  %s1739_s1, 2048, %s3160_s9, [#allocation6], %s2576_s17, %s2576_s17, %s2577_s18  }
 0x2bc   :  { %v3121_v40 = vld [vmem:[%s3159_s8] ss:$0 sm:$0xff]  ;;  %s2584_s8 = smov [#allocation17]  }
 0x2bd   :  { %s1774_s9 = sshll.u32 %s2584_s8, 4  ;;  %s1775_s9 = int_to_ptr.vmem [resolvable:$true] %s1774_s9 }
 0x2be   :  { %s2519_s10 = scalar_lea.vmem %s1775_s9, 2048  ;;  %p2524_p8 = scmp.lt.s32.totalorder %s1775_s9, %s1775_s9 }
 0x2bf   :  { %p2520_p7 = scmp.ne.s32.totalorder %s1775_s9, %s2519_s10  ;;  %p2525_p9 = scmp.lt.s32.totalorder %s2519_s10, %s2519_s10 }
 0x2c1   :  { %p2526_p10 = por %p2525_p9, %p2524_p8 }
 0x2c3   :  { %p2527_p11 = pnand %p2526_p10, %p2520_p7 }
 0x313   :  { %v2148_v28 = vpop.f32.mrf.mxu0 }
 0x314   :  { %v1535_v16 = vadd.f32 %v2148_v28, %v3121_v40 }
 0x315   :  { %v1526_v51 = vpop.f32.mrf.mxu0 }
 0x316   :  { %v1527_v3 = vadd.f32 %v3121_v40, %v1526_v51  ;;  %2347 = vtanh.f32 %v1535_v16 }
 0x317   :  { %v2149_v21 = vpop.f32.mrf.mxu0 }
 0x318   :  { %v1538_v31 = vadd.f32 %v2149_v21, %v3121_v40  ;;  %v1386_v24 = vpop.xlane.xlu0 %1385 }
 0x319   :  { %1719 = vst [vmem:[#allocation17 + $0x10] sm:$0xff] %v1386_v24  ;;  %v1529_v34 = vpop.f32.mrf.mxu0 }
 0x31a   :  { %2349 = vtanh.f32 %v1538_v31  ;;  %v1530_v35 = vadd.f32 %v3121_v40, %v1529_v34  ;;  %v1382_v54 = vpop.xlane.xlu1 %1381 }
 0x31b   :  { %2351 = vtanh.f32 %v1527_v3  ;;  %1717 = vst [vmem:[#allocation17] sm:$0xff] %v1382_v54 }
 0x31c   :  { %2353 = vtanh.f32 %v1530_v35 }
 0x31e   :  { %v1384_v39 = vpop.xlane.xlu0 %1383  ;;  %v1388_v36 = vpop.xlane.xlu1 %1387 }
 0x31f   :  { %1718 = vst [vmem:[#allocation17 + $0x8] sm:$0xff] %v1384_v39  ;;  %1720 = vst [vmem:[#allocation17 + $0x18] sm:$0xff] %v1388_v36 }
 0x322   :  { %v1394_v33 = vpop.xlane.xlu0 %1393 }
 0x323   :  { %v2152_v42 = vpop.f32.mrf.mxu0  ;;  %1723 = vst [vmem:[#allocation17 + $0x30] sm:$0xff] %v1394_v33  ;;  %v1396_v7 = vpop.xlane.xlu1 %1395 }
 0x324   :  { %v1551_v26 = vadd.f32 %v2152_v42, %v3121_v40  ;;  %1724 = vst [vmem:[#allocation17 + $0x38] sm:$0xff] %v1396_v7  ;;  %v2348_v9 = vpop.eup %2347 }
 0x325   :  { %v1542_v10 = vpop.f32.mrf.mxu0 }
 0x326   :  { %v1543_v20 = vadd.f32 %v3121_v40, %v1542_v10  ;;  %v1390_v45 = vpop.xlane.xlu0 %1389  ;;  %2355 = vtanh.f32 %v1551_v26 }
 0x327   :  { %v2350_v41 = vpop.eup %2349  ;;  %v2153_v15 = vpop.f32.mrf.mxu0  ;;  %1721 = vst [vmem:[#allocation17 + $0x20] sm:$0xff] %v1390_v45 }
 0x328   :  { %v2352_v49 = vpop.eup %2351  ;;  %v1915_v46 = vpack.c.bf16 %v2350_v41, %v2348_v9  ;;  %v1554_v53 = vadd.f32 %v2153_v15, %v3121_v40  ;;  %v1392_v32 = vpop.xlane.xlu1 %1391 }
 0x329   :  { %v2354_v30 = vpop.eup %2353  ;;  %1722 = vst [vmem:[#allocation17 + $0x28] sm:$0xff] %v1392_v32  ;;  %v1545_v29 = vpop.f32.mrf.mxu0 }
 0x32a   :  { %1947 = vst [vmem:[#allocation16 + $0x8] sm:$0xff] %v1915_v46   ;;  %v1910_v38 = vpack.c.bf16 %v2354_v30, %v2352_v49  ;;  %2357 = vtanh.f32 %v1554_v53  ;;  %v1546_v55 = vadd.f32 %v3121_v40, %v1545_v29  ;;  %v1402_v58 = vpop.xlane.xlu0 %1401 }
 0x32b   :  { %2359 = vtanh.f32 %v1543_v20  ;;  %v2156_v43 = vpop.f32.mrf.mxu1  ;;  %1727 = vst [vmem:[#allocation17 + $0x50] sm:$0xff] %v1402_v58 }
 0x32c   :  { %1911 = vst [vmem:[#allocation16] sm:$0xff] %v1910_v38   ;;  %2361 = vtanh.f32 %v1546_v55  ;;  %v1404_v22 = vpop.xlane.xlu1 %1403  ;;  %v1567_v59 = vadd.f32 %v2156_v43, %v3121_v40 }
 0x32d   :  { %1728 = vst [vmem:[#allocation17 + $0x58] sm:$0xff] %v1404_v22  ;;  %v1558_v60 = vpop.f32.mrf.mxu1 }
 0x32e   :  { %v1559_v63 = vadd.f32 %v3121_v40, %v1558_v60  ;;  %v1398_v12 = vpop.xlane.xlu0 %1397  ;;  %2363 = vtanh.f32 %v1567_v59 }
 0x32f   :  { %v2157_v50 = vpop.f32.mrf.mxu1  ;;  %1725 = vst [vmem:[#allocation17 + $0x40] sm:$0xff] %v1398_v12 }
 0x330   :  { %v1570_v57 = vadd.f32 %v2157_v50, %v3121_v40  ;;  %v1400_v48 = vpop.xlane.xlu1 %1399 }
 0x331   :  { %1726 = vst [vmem:[#allocation17 + $0x48] sm:$0xff] %v1400_v48  ;;  %v1561_v13 = vpop.f32.mrf.mxu1 }
 0x332   :  { %2365 = vtanh.f32 %v1570_v57  ;;  %v1562_v4 = vadd.f32 %v3121_v40, %v1561_v13  ;;  %v1406_v61 = vpop.xlane.xlu0 %1405 }
 0x333   :  { %2367 = vtanh.f32 %v1559_v63  ;;  %v2160_v5 = vpop.f32.mrf.mxu1  ;;  %1729 = vst [vmem:[#allocation17 + $0x60] sm:$0xff] %v1406_v61  ;;  %v2356_v6 = vpop.eup %2355 }
 0x334   :  { %2369 = vtanh.f32 %v1562_v4  ;;  %v1583_v62 = vadd.f32 %v2160_v5, %v3121_v40 }
 0x335   :  { %v1574_v37 = vpop.f32.mrf.mxu1  ;;  %v1408_v1 = vpop.xlane.xlu1 %1407 }
 0x336   :  { %1730 = vst [vmem:[#allocation17 + $0x68] sm:$0xff] %v1408_v1  ;;  %v1575_v0 = vadd.f32 %v3121_v40, %v1574_v37  ;;  %v1410_v52 = vpop.xlane.xlu0 %1409  ;;  %2371 = vtanh.f32 %v1583_v62 }
 0x337   :  { %v2358_v27 = vpop.eup %2357  ;;  %v2161_v18 = vpop.f32.mrf.mxu1  ;;  %1731 = vst [vmem:[#allocation17 + $0x70] sm:$0xff] %v1410_v52 }
 0x338   :  { %v2360_v25 = vpop.eup %2359  ;;  %v1925_v23 = vpack.c.bf16 %v2358_v27, %v2356_v6  ;;  %v1586_v47 = vadd.f32 %v2161_v18, %v3121_v40 }
 0x339   :  { %v2362_v14 = vpop.eup %2361  ;;  %v1577_v44 = vpop.f32.mrf.mxu1 }
 0x33a   :  { %1949 = vst [vmem:[#allocation16 + $0x18] sm:$0xff] %v1925_v23   ;;  %v1920_v17 = vpack.c.bf16 %v2362_v14, %v2360_v25  ;;  %2373 = vtanh.f32 %v1586_v47  ;;  %v1412_v19 = vpop.xlane.xlu1 %1411  ;;  %v1578_v2 = vadd.f32 %v3121_v40, %v1577_v44 }
 0x33b   :  { %2375 = vtanh.f32 %v1575_v0  ;;  %1732 = vst [vmem:[#allocation17 + $0x78] sm:$0xff] %v1412_v19 }
 0x33c   :  { %1948 = vst [vmem:[#allocation16 + $0x10] sm:$0xff] %v1920_v17   ;;  %2377 = vtanh.f32 %v1578_v2 }
 0x33d   :  { %2530 = shalt.err (!%p2527_p11)
}
 0x33e   :  { %1780 = dma.vmem_to_hbm [thread:$0]  %s1775_s9, 2048, %s3163_s12, [#allocation18], %s2576_s17, %s2576_s17, %s2577_s18   ;;  %v2364_v8 = vpop.eup %2363 }
 0x33f   :  { %v2366_v56 = vpop.eup %2365  ;;  %s2585_s29 = smov [#allocation16]  }
 0x340   :  { %v2368_v11 = vpop.eup %2367  ;;  %v1935_v40 = vpack.c.bf16 %v2366_v56, %v2364_v8  ;;  %s1762_s30 = sshll.u32 %s2585_s29, 4  ;;  %s1763_s30 = int_to_ptr.vmem [resolvable:$true] %s1762_s30 }
 0x341   :  { %v2370_v28 = vpop.eup %2369  ;;  %s2539_s12 = scalar_lea.vmem %s1763_s30, 1024  ;;  %p2544_p13 = scmp.lt.s32.totalorder %s1763_s30, %s1763_s30 }
 0x342   :  { %1951 = vst [vmem:[#allocation16 + $0x28] sm:$0xff] %v1935_v40   ;;  %v1930_v16 = vpack.c.bf16 %v2370_v28, %v2368_v11  ;;  %p2540_p12 = scmp.ne.s32.totalorder %s1763_s30, %s2539_s12  ;;  %p2545_p0 = scmp.lt.s32.totalorder %s2539_s12, %s2539_s12 }
 0x343   :  { %v2372_v51 = vpop.eup %2371 }
 0x344   :  { %1950 = vst [vmem:[#allocation16 + $0x20] sm:$0xff] %v1930_v16   ;;  %p2546_p1 = por %p2545_p0, %p2544_p13 }
 0x346   :  { %p2547_p2 = pnand %p2546_p1, %p2540_p12 }
 0x347   :  { %v2374_v3 = vpop.eup %2373 }
 0x348   :  { %v2376_v21 = vpop.eup %2375  ;;  %v1945_v31 = vpack.c.bf16 %v2374_v3, %v2372_v51 }
 0x349   :  { %v2378_v24 = vpop.eup %2377 }
 0x34a   :  { %1953 = vst [vmem:[#allocation16 + $0x38] sm:$0xff] %v1945_v31   ;;  %v1940_v34 = vpack.c.bf16 %v2378_v24, %v2376_v21 }
 0x34c   :  { %1952 = vst [vmem:[#allocation16 + $0x30] sm:$0xff] %v1940_v34  }
 0x34d   :  { %2550 = shalt.err (!%p2547_p2)
}
 0x34e   :  { %1768 = dma.vmem_to_hbm [thread:$0]  %s1763_s30, 1024, %s3162_s11, [#allocation15], %s2572_s24, %s2572_s24, %s2573_s25  }
 0x34f   :  { %2565 = dma.done.wait [#allocation6], 2048  }
 0x350   :  { %2566 = vsyncadd [#allocation6], 4294965248 }
 0x351   :  { %2567 = dma.done.wait [#allocation15], 3072  }
 0x352   :  { %2568 = vsyncadd [#allocation15], 4294964224 }
 0x353   :  { %2569 = dma.done.wait [#allocation18], 2048  }
 0x354   :  { %2570 = vsyncadd [#allocation18], 4294965248 }
 0x355   :  { %1793 = vsyncpa [#allocation5], 1 }
 0x356   :  { %1794 = vsyncpa [#allocation8], 1 }
 0x357   :  { %1795 = vsyncpa [#allocation11], 1 }
 0x358   :  { %1796 = vsyncpa [#allocation6], 1 }
 0x359   :  { %1797 = vsyncpa [#allocation15], 1 }
 0x35a   :  { %1798 = vsyncpa [#allocation18], 1 }

</bundles_post_ra>
